<compile_context>
chip_gen: v5e
topology: v5e:2x2
jax: 0.10.0
libtpu: 0.0.40
codegen_flags: <defaults>
</compile_context>

<pallas_src>
import functools

import jax
import jax.numpy as jnp
import numpy as np
from jax.experimental import pallas as pl
from jax.experimental.pallas import tpu as pltpu


_VMEM_LIMIT = 48 * 1024 * 1024  # re-derived for v7x (64 MiB physical); also fine on v5e/v6e


def _cparams(*dim_sem):
    return pltpu.CompilerParams(
        dimension_semantics=tuple(dim_sem),
        vmem_limit_bytes=_VMEM_LIMIT,
    )


def _pick_tile(n, quantum, max_tile):
    """Largest multiple of `quantum` that divides n and is <= max_tile (else the full extent)."""
    t = min(n, max_tile)
    t -= t % quantum
    while t >= quantum:
        if n % t == 0:
            return t
        t -= quantum
    return n


# ----------------------------------------------------------------------------
# Fused QKV projection (one batch element per grid step).
#   Computes [L, E] @ [E, 3*H*d] + bias, then writes the head-major layout
#   [1, 3, H, L, d] directly (no wrapper-side transpose), plus a bf16 residual copy.
# ----------------------------------------------------------------------------
def _qkv_proj_kernel(n_heads, qkv_dim, x_ref, w_ref, b_ref, qkv_ref, res_ref):
    x = x_ref[0].astype(jnp.bfloat16)                                     # [L, E]
    y = jnp.dot(x, w_ref[...], preferred_element_type=jnp.float32) + b_ref[...]
    y = y.astype(jnp.bfloat16)                                            # [L, 3*H*d]
    hd = n_heads * qkv_dim
    for s in range(3):                                                    # static unroll
        for h in range(n_heads):
            c = s * hd + h * qkv_dim
            qkv_ref[0, s, h, :, :] = y[:, c:c + qkv_dim]                  # [L, d] bf16
    res_ref[0, :, :] = x                                                  # bf16 residual copy


# ----------------------------------------------------------------------------
# Attention kernel (one grid step == one batch element).
#   qkv_ref:  [1, 3, H, L, d] bf16 (head-major, 1/sqrt(d) folded into W_Q)
#   bias_ref: [1, L, L] bf16 additive mask bias (-1e9 where masked, 0 elsewhere)
#   res_ref:  [1, L, E] bf16 residual
#   wo_ref:   [H*d, E] bf16, bo_ref: [1, E] f32
#   out_ref:  [1, L, E] bf16 = LayerNorm(W_O(context) + residual)   (f32 compute)
#   attn_ref: [1, H, L, L] bf16 softmax probabilities
# ----------------------------------------------------------------------------
def _attn_kernel(qkv_ref, bias_ref, res_ref, wo_ref, bo_ref, out_ref, attn_ref):
    q = qkv_ref[0, 0]                                                     # [H, L, d] bf16
    k = qkv_ref[0, 1]
    v = qkv_ref[0, 2]

    # scores (scale already folded into W_Q), additive mask bias, softmax
    scores = jnp.einsum("hqd,hkd->hqk", q, k, preferred_element_type=jnp.float32)
    scores = scores + bias_ref[0].astype(jnp.float32)[None, :, :]
    m_max = jnp.max(scores, axis=-1, keepdims=True)
    e = jnp.exp(scores - m_max)
    p = e * pl.reciprocal(jnp.sum(e, axis=-1, keepdims=True), approx=True)
    p_bf = p.astype(jnp.bfloat16)
    attn_ref[0] = p_bf

    ctx = jnp.einsum("hqk,hkd->hqd", p_bf, v,
                     preferred_element_type=jnp.float32).astype(jnp.bfloat16)  # [H, L, d]

    # W_O as ONE K = H*d contraction: [L, H*d] @ [H*d, E]  (full MXU depth, no per-head loop)
    ctx_cat = jnp.concatenate([ctx[h] for h in range(ctx.shape[0])], axis=-1)  # [L, H*d]
    y = jnp.dot(ctx_cat, wo_ref[...], preferred_element_type=jnp.float32)      # [L, E] f32

    # + bias + residual, then fresh nn.LayerNorm(embed_dim): gamma=1, beta=0, eps=1e-5
    z = y + res_ref[0].astype(jnp.float32) + bo_ref[...]
    mean = jnp.mean(z, axis=-1, keepdims=True)
    var = jnp.mean(jnp.square(z - mean), axis=-1, keepdims=True)
    out_ref[0] = ((z - mean) * jax.lax.rsqrt(var + 1e-5)).astype(out_ref.dtype)


def multi_head_self_attention(x, attn_mask, params, *, n_heads, qkv_dim):
    """x: [B, L, E] (Q = K = V), attn_mask: [B, L, L] bool (True = masked)."""
    B, L, E = x.shape
    HD = n_heads * qkv_dim
    wq, bq, wk, bk, wv, bv, wo, bo = params

    # one-time weight prep: fold 1/sqrt(QKVdim) into W_Q/b_Q, fuse Q/K/V, cast to bf16
    scale = float(1.0 / np.sqrt(qkv_dim))
    wqkv = jnp.concatenate([wq * scale, wk, wv], axis=1).astype(jnp.bfloat16)   # [E, 3*HD]
    bqkv = jnp.concatenate([bq * scale, bk, bv], axis=1)                        # [1, 3*HD] f32
    wo_bf = wo.astype(jnp.bfloat16)                                             # [HD, E]

    # 1) fused QKV projection; writes head-major bf16 qkv + bf16 residual copy
    qkv5, res_bf = pl.pallas_call(
        functools.partial(_qkv_proj_kernel, n_heads, qkv_dim),
        out_shape=(
            jax.ShapeDtypeStruct((B, 3, n_heads, L, qkv_dim), jnp.bfloat16),
            jax.ShapeDtypeStruct((B, L, E), jnp.bfloat16),
        ),
        grid=(B,),
        in_specs=[
            pl.BlockSpec((1, L, E), lambda b: (b, 0, 0)),
            pl.BlockSpec((E, 3 * HD), lambda b: (0, 0),
                         pipeline_mode=pl.Buffered(1)),      # grid-invariant: single-buffer
            pl.BlockSpec((1, 3 * HD), lambda b: (0, 0)),
        ],
        out_specs=(
            pl.BlockSpec((1, 3, n_heads, L, qkv_dim), lambda b: (b, 0, 0, 0, 0)),
            pl.BlockSpec((1, L, E), lambda b: (b, 0, 0)),
        ),
        compiler_params=_cparams("parallel"),
    )(x, wqkv, bqkv)

    # additive mask bias (bf16): -1e9 where masked, 0 elsewhere
    mask_bias = jnp.where(attn_mask, jnp.float32(-1e9), jnp.float32(0.0)).astype(jnp.bfloat16)

    # 2) attention + output projection + residual + LayerNorm, one batch element per step
    out, attn = pl.pallas_call(
        _attn_kernel,
        out_shape=(
            jax.ShapeDtypeStruct((B, L, E), jnp.bfloat16),
            jax.ShapeDtypeStruct((B, n_heads, L, L), jnp.bfloat16),
        ),
        grid=(B,),
        in_specs=[
            pl.BlockSpec((1, 3, n_heads, L, qkv_dim), lambda b: (b, 0, 0, 0, 0)),
            pl.BlockSpec((1, L, L), lambda b: (b, 0, 0)),
            pl.BlockSpec((1, L, E), lambda b: (b, 0, 0)),
            pl.BlockSpec((HD, E), lambda b: (0, 0),
                         pipeline_mode=pl.Buffered(1)),      # grid-invariant: single-buffer
            pl.BlockSpec((1, E), lambda b: (0, 0)),
        ],
        out_specs=(
            pl.BlockSpec((1, L, E), lambda b: (b, 0, 0)),
            pl.BlockSpec((1, n_heads, L, L), lambda b: (b, 0, 0, 0)),
        ),
        compiler_params=_cparams("parallel"),
    )(qkv5, mask_bias, res_bf, wo_bf, bo)
    return out, attn


# ----------------------------------------------------------------------------
# Position-wise FFN: LayerNorm(relu(x@W1+b1)@W2 + b2 + x), tiled over rows AND d_ff.
#   grid = (M//tm, F//tf); f32 accumulator [tm, E] resident across the F axis.
# ----------------------------------------------------------------------------
def _ffn_kernel(x_ref, w1_ref, b1_ref, w2_ref, b2_ref, out_ref, acc_ref):
    j = pl.program_id(1)

    @pl.when(j == 0)
    def _():
        acc_ref[...] = x_ref[...].astype(jnp.float32) + b2_ref[...]       # residual + b2

    h = jnp.dot(x_ref[...], w1_ref[...], preferred_element_type=jnp.float32) + b1_ref[...]
    h = jnp.maximum(h, 0.0).astype(jnp.bfloat16)                          # ReLU (exact per F-chunk)
    acc_ref[...] += jnp.dot(h, w2_ref[...], preferred_element_type=jnp.float32)

    @pl.when(j == pl.num_programs(1) - 1)
    def _():
        z = acc_ref[...]
        mean = jnp.mean(z, axis=-1, keepdims=True)
        var = jnp.mean(jnp.square(z - mean), axis=-1, keepdims=True)
        out_ref[...] = ((z - mean) * jax.lax.rsqrt(var + 1e-5)).astype(out_ref.dtype)


def poswise_ffn(x_bf16, params):
    B, L, E = x_bf16.shape
    w1, b1, w2, b2 = params
    F = w1.shape[1]
    M = B * L
    tm = _pick_tile(M, 8, 512)
    tf = _pick_tile(F, 128, 1024)
    x_flat = x_bf16.reshape(M, E)
    out_flat = pl.pallas_call(
        _ffn_kernel,
        out_shape=jax.ShapeDtypeStruct((M, E), jnp.float32),
        grid=(M // tm, F // tf),
        in_specs=[
            pl.BlockSpec((tm, E), lambda i, j: (i, 0)),
            pl.BlockSpec((E, tf), lambda i, j: (0, j)),       # streamed F-chunks of W1
            pl.BlockSpec((1, tf), lambda i, j: (0, j)),
            pl.BlockSpec((tf, E), lambda i, j: (j, 0)),       # streamed F-chunks of W2
            pl.BlockSpec((1, E), lambda i, j: (0, 0)),
        ],
        out_specs=pl.BlockSpec((tm, E), lambda i, j: (i, 0)),
        scratch_shapes=[pltpu.VMEM((tm, E), jnp.float32)],
        compiler_params=_cparams("parallel", "arbitrary"),
    )(x_flat, w1.astype(jnp.bfloat16), b1, w2.astype(jnp.bfloat16), b2)
    return out_flat.reshape(B, L, E)


# ----------------------------------------------------------------------------
# Parameter construction (deterministic, stands in for nn.Linear / nn.Conv1d k=1)
# ----------------------------------------------------------------------------
def _linear_params(key, d_in, d_out, scale=0.02):
    kw, kb = jax.random.split(key)
    w = scale * jax.random.normal(kw, (d_in, d_out), jnp.float32)
    b = scale * jax.random.normal(kb, (1, d_out), jnp.float32)
    return w, b


def make_encoder_layer_params(key, embed_dim, n_heads, qkv_dim, d_ff):
    ks = jax.random.split(key, 6)
    hd = n_heads * qkv_dim
    mha = (*_linear_params(ks[0], embed_dim, hd),    # W_Q
           *_linear_params(ks[1], embed_dim, hd),    # W_K
           *_linear_params(ks[2], embed_dim, hd),    # W_V
           *_linear_params(ks[3], hd, embed_dim))    # W_O
    ffn = (*_linear_params(ks[4], embed_dim, d_ff),  # conv1 (kernel_size=1 == Linear)
           *_linear_params(ks[5], d_ff, embed_dim))  # conv2 (kernel_size=1 == Linear)
    return mha, ffn


def encoder_layer(enc_inputs, enc_self_attn_mask, params, *, n_heads, qkv_dim):
    mha_params, ffn_params = params
    attn_out, attn = multi_head_self_attention(
        enc_inputs, enc_self_attn_mask, mha_params,
        n_heads=n_heads, qkv_dim=qkv_dim)
    enc_out = poswise_ffn(attn_out, ffn_params)
    return enc_out, attn


if __name__ == "__main__":
    # SMALL shapes consistent with the module's forward contract
    # (full size would be num_pixels=196, embed_dim=2048, d_ff=4096, n_heads=8).
    B = 2
    num_pixels = 16
    embed_dim = 128
    n_heads = 2
    qkv_dim = 64          # fixed to 64 in the reference module
    d_ff = 256

    key = jax.random.PRNGKey(0)
    k_x, k_p = jax.random.split(key)

    enc_inputs = jax.random.normal(k_x, (B, num_pixels, embed_dim), jnp.float32)
    # ByPixel encoder self-attention mask (True = masked); no padded pixels in this example.
    enc_self_attn_mask = jnp.zeros((B, num_pixels, num_pixels), jnp.bool_)

    params = make_encoder_layer_params(k_p, embed_dim, n_heads, qkv_dim, d_ff)

    fwd = jax.jit(functools.partial(encoder_layer, n_heads=n_heads, qkv_dim=qkv_dim))
    enc_out, attn = fwd(enc_inputs, enc_self_attn_mask, params)

    jax.block_until_ready((enc_out, attn))
    assert enc_out.shape == (B, num_pixels, embed_dim)
    assert attn.shape == (B, n_heads, num_pixels, num_pixels)
    print("KERNEL_OK")
</pallas_src>

<mosaic_0001>
module attributes {stable_mosaic.version = 11 : i64} {
  func.func @_attn_kernel(%arg0: i32, %arg1: memref<1x3x2x16x64xbf16, #tpu.memory_space<vmem>>, %arg2: memref<1x16x16xbf16, #tpu.memory_space<vmem>>, %arg3: memref<1x16x128xbf16, #tpu.memory_space<vmem>>, %arg4: memref<128x128xbf16, #tpu.memory_space<vmem>>, %arg5: memref<1x128xf32, #tpu.memory_space<vmem>>, %arg6: memref<1x16x128xbf16, #tpu.memory_space<vmem>>, %arg7: memref<1x2x16x16xbf16, #tpu.memory_space<vmem>>) attributes {dimension_semantics = [#tpu.dimension_semantics<parallel>], iteration_bounds = array<i64: 2>, scalar_prefetch = 0 : i64, scratch_operands = 0 : i64, tpu.core_type = #tpu.core_type<tc>, window_params = [{transform_indices = @transform_0, window_bounds = array<i64: 1, 3, 2, 16, 64>}, {transform_indices = @transform_1, window_bounds = array<i64: 1, 16, 16>}, {transform_indices = @transform_2, window_bounds = array<i64: 1, 16, 128>}, {pipeline_mode = #tpu.pipeline_mode<synchronous>, transform_indices = @transform_3, window_bounds = array<i64: 128, 128>}, {pipeline_mode = #tpu.pipeline_mode<synchronous>, transform_indices = @transform_4, window_bounds = array<i64: 1, 128>}, {transform_indices = @transform_5, window_bounds = array<i64: 1, 16, 128>}, {transform_indices = @transform_6, window_bounds = array<i64: 1, 2, 16, 16>}]} {
    %c0 = arith.constant 0 : index
    %c0_0 = arith.constant 0 : index
    %c0_1 = arith.constant 0 : index
    %c0_2 = arith.constant 0 : index
    %c0_3 = arith.constant 0 : index
    %0 = vector.load %arg1[%c0, %c0_0, %c0_1, %c0_2, %c0_3] : memref<1x3x2x16x64xbf16, #tpu.memory_space<vmem>>, vector<1x1x2x16x64xbf16>
    %1 = vector.shape_cast %0 : vector<1x1x2x16x64xbf16> to vector<2x16x64xbf16>
    %c0_4 = arith.constant 0 : index
    %c1 = arith.constant 1 : index
    %c0_5 = arith.constant 0 : index
    %c0_6 = arith.constant 0 : index
    %c0_7 = arith.constant 0 : index
    %2 = vector.load %arg1[%c0_4, %c1, %c0_5, %c0_6, %c0_7] : memref<1x3x2x16x64xbf16, #tpu.memory_space<vmem>>, vector<1x1x2x16x64xbf16>
    %3 = vector.shape_cast %2 : vector<1x1x2x16x64xbf16> to vector<2x16x64xbf16>
    %c0_8 = arith.constant 0 : index
    %c2 = arith.constant 2 : index
    %c0_9 = arith.constant 0 : index
    %c0_10 = arith.constant 0 : index
    %c0_11 = arith.constant 0 : index
    %4 = vector.load %arg1[%c0_8, %c2, %c0_9, %c0_10, %c0_11] : memref<1x3x2x16x64xbf16, #tpu.memory_space<vmem>>, vector<1x1x2x16x64xbf16>
    %5 = vector.shape_cast %4 : vector<1x1x2x16x64xbf16> to vector<2x16x64xbf16>
    "tpu.trace_start"() <{level = 10 : i32, message = "hqd,hkd->hqk"}> : () -> ()
    %cst = arith.constant dense<0.000000e+00> : vector<2x16x16xf32>
    %6 = tpu.matmul %1, %3, %cst {dimension_numbers = #tpu.dot_dimension_numbers<[2], [2], [1], [1], [0, 0, 0, 1, 1, 1], [0], [0]>} : vector<2x16x64xbf16>, vector<2x16x64xbf16>, vector<2x16x16xf32> -> vector<2x16x16xf32>
    "tpu.trace_stop"() : () -> ()
    %c0_12 = arith.constant 0 : index
    %c0_13 = arith.constant 0 : index
    %c0_14 = arith.constant 0 : index
    %7 = vector.load %arg2[%c0_12, %c0_13, %c0_14] : memref<1x16x16xbf16, #tpu.memory_space<vmem>>, vector<1x16x16xbf16>
    %8 = vector.shape_cast %7 : vector<1x16x16xbf16> to vector<16x16xbf16>
    %9 = arith.extf %8 : vector<16x16xbf16> to vector<16x16xf32>
    %10 = vector.shape_cast %9 : vector<16x16xf32> to vector<1x16x16xf32>
    %11 = vector.broadcast %10 : vector<1x16x16xf32> to vector<2x16x16xf32>
    %12 = arith.addf %6, %11 : vector<2x16x16xf32>
    %cst_15 = arith.constant dense<0xFF800000> : vector<2x16xf32>
    %13 = vector.multi_reduction <maximumf>, %12, %cst_15 [2] : vector<2x16x16xf32> to vector<2x16xf32>
    %14 = vector.shape_cast %13 : vector<2x16xf32> to vector<2x16x1xf32>
    %15 = vector.broadcast %14 : vector<2x16x1xf32> to vector<2x16x16xf32>
    %16 = arith.subf %12, %15 : vector<2x16x16xf32>
    %17 = math.exp %16 : vector<2x16x16xf32>
    %cst_16 = arith.constant dense<0.000000e+00> : vector<2x16xf32>
    %18 = vector.multi_reduction <add>, %17, %cst_16 [2] : vector<2x16x16xf32> to vector<2x16xf32>
    %19 = vector.shape_cast %18 : vector<2x16xf32> to vector<2x16x1xf32>
    %20 = tpu.reciprocal %19 {approx = true} : vector<2x16x1xf32> -> vector<2x16x1xf32>
    %21 = vector.broadcast %20 : vector<2x16x1xf32> to vector<2x16x16xf32>
    %22 = arith.mulf %17, %21 : vector<2x16x16xf32>
    %23 = arith.truncf %22 : vector<2x16x16xf32> to vector<2x16x16xbf16>
    %c0_17 = arith.constant 0 : index
    %c0_18 = arith.constant 0 : index
    %c0_19 = arith.constant 0 : index
    %c0_20 = arith.constant 0 : index
    %24 = vector.load %arg7[%c0_17, %c0_18, %c0_19, %c0_20] : memref<1x2x16x16xbf16, #tpu.memory_space<vmem>>, vector<1x2x16x16xbf16>
    %25 = vector.shape_cast %24 : vector<1x2x16x16xbf16> to vector<2x16x16xbf16>
    %26 = vector.shape_cast %23 : vector<2x16x16xbf16> to vector<1x2x16x16xbf16>
    tpu.vector_store %arg7[%c0_17, %c0_18, %c0_19, %c0_20], %26 {strides = array<i32>} : memref<1x2x16x16xbf16, #tpu.memory_space<vmem>>, vector<1x2x16x16xbf16>,
    "tpu.trace_start"() <{level = 10 : i32, message = "hqk,hkd->hqd"}> : () -> ()
    %cst_21 = arith.constant dense<0.000000e+00> : vector<2x16x64xf32>
    %27 = tpu.matmul %23, %5, %cst_21 {dimension_numbers = #tpu.dot_dimension_numbers<[2], [1], [1], [2], [0, 0, 0, 1, 1, 2], [0], [0]>} : vector<2x16x16xbf16>, vector<2x16x64xbf16>, vector<2x16x64xf32> -> vector<2x16x64xf32>
    "tpu.trace_stop"() : () -> ()
    %28 = arith.truncf %27 : vector<2x16x64xf32> to vector<2x16x64xbf16>
    %29 = vector.extract_strided_slice %28 {offsets = [0, 0, 0], sizes = [1, 16, 64], strides = [1, 1, 1]} : vector<2x16x64xbf16> to vector<1x16x64xbf16>
    %30 = vector.shape_cast %29 : vector<1x16x64xbf16> to vector<16x64xbf16>
    %31 = vector.extract_strided_slice %28 {offsets = [1, 0, 0], sizes = [1, 16, 64], strides = [1, 1, 1]} : vector<2x16x64xbf16> to vector<1x16x64xbf16>
    %32 = vector.shape_cast %31 : vector<1x16x64xbf16> to vector<16x64xbf16>
    %33 = tpu.concatenate %30, %32 in 1 : vector<16x64xbf16>, vector<16x64xbf16> -> vector<16x128xbf16>
    %c0_22 = arith.constant 0 : index
    %c0_23 = arith.constant 0 : index
    %34 = vector.load %arg4[%c0_22, %c0_23] : memref<128x128xbf16, #tpu.memory_space<vmem>>, vector<128x128xbf16>
    %cst_24 = arith.constant dense<0.000000e+00> : vector<16x128xf32>
    %35 = tpu.matmul %33, %34, %cst_24 {dimension_numbers = #tpu.dot_dimension_numbers<[1], [0], [0], [1], [0, 0, 1, 1], [], []>} : vector<16x128xbf16>, vector<128x128xbf16>, vector<16x128xf32> -> vector<16x128xf32>
    %c0_25 = arith.constant 0 : index
    %c0_26 = arith.constant 0 : index
    %c0_27 = arith.constant 0 : index
    %36 = vector.load %arg3[%c0_25, %c0_26, %c0_27] : memref<1x16x128xbf16, #tpu.memory_space<vmem>>, vector<1x16x128xbf16>
    %37 = vector.shape_cast %36 : vector<1x16x128xbf16> to vector<16x128xbf16>
    %38 = arith.extf %37 : vector<16x128xbf16> to vector<16x128xf32>
    %39 = arith.addf %35, %38 : vector<16x128xf32>
    %c0_28 = arith.constant 0 : index
    %c0_29 = arith.constant 0 : index
    %40 = vector.load %arg5[%c0_28, %c0_29] : memref<1x128xf32, #tpu.memory_space<vmem>>, vector<1x128xf32>
    %41 = vector.broadcast %40 : vector<1x128xf32> to vector<16x128xf32>
    %42 = arith.addf %39, %41 : vector<16x128xf32>
    %cst_30 = arith.constant dense<0.000000e+00> : vector<16xf32>
    %43 = vector.multi_reduction <add>, %42, %cst_30 [1] : vector<16x128xf32> to vector<16xf32>
    %44 = vector.shape_cast %43 : vector<16xf32> to vector<16x1xf32>
    %cst_31 = arith.constant 1.280000e+02 : f32
    %45 = vector.broadcast %cst_31 : f32 to vector<16x1xf32>
    %46 = arith.divf %44, %45 : vector<16x1xf32>
    %47 = vector.broadcast %46 : vector<16x1xf32> to vector<16x128xf32>
    %48 = arith.subf %42, %47 : vector<16x128xf32>
    %49 = arith.mulf %48, %48 : vector<16x128xf32>
    %cst_32 = arith.constant dense<0.000000e+00> : vector<16xf32>
    %50 = vector.multi_reduction <add>, %49, %cst_32 [1] : vector<16x128xf32> to vector<16xf32>
    %51 = vector.shape_cast %50 : vector<16xf32> to vector<16x1xf32>
    %cst_33 = arith.constant 1.280000e+02 : f32
    %52 = vector.broadcast %cst_33 : f32 to vector<16x1xf32>
    %53 = arith.divf %51, %52 : vector<16x1xf32>
    %54 = vector.broadcast %46 : vector<16x1xf32> to vector<16x128xf32>
    %55 = arith.subf %42, %54 : vector<16x128xf32>
    %cst_34 = arith.constant 9.99999974E-6 : f32
    %56 = vector.broadcast %cst_34 : f32 to vector<16x1xf32>
    %57 = arith.addf %53, %56 : vector<16x1xf32>
    %58 = math.rsqrt %57 : vector<16x1xf32>
    %59 = vector.broadcast %58 : vector<16x1xf32> to vector<16x128xf32>
    %60 = arith.mulf %55, %59 : vector<16x128xf32>
    %61 = arith.truncf %60 : vector<16x128xf32> to vector<16x128xbf16>
    %c0_35 = arith.constant 0 : index
    %c0_36 = arith.constant 0 : index
    %c0_37 = arith.constant 0 : index
    %62 = vector.load %arg6[%c0_35, %c0_36, %c0_37] : memref<1x16x128xbf16, #tpu.memory_space<vmem>>, vector<1x16x128xbf16>
    %63 = vector.shape_cast %62 : vector<1x16x128xbf16> to vector<16x128xbf16>
    %64 = vector.shape_cast %61 : vector<16x128xbf16> to vector<1x16x128xbf16>
    tpu.vector_store %arg6[%c0_35, %c0_36, %c0_37], %64 {strides = array<i32>} : memref<1x16x128xbf16, #tpu.memory_space<vmem>>, vector<1x16x128xbf16>,
    return
  }
  func.func @transform_0(%arg0: i32) -> (i32, i32, i32, i32, i32) {
    %c0_i32 = arith.constant 0 : i32
    %c0_i32_0 = arith.constant 0 : i32
    %c0_i32_1 = arith.constant 0 : i32
    %c0_i32_2 = arith.constant 0 : i32
    %c0_i32_3 = arith.constant 0 : i32
    return %arg0, %c0_i32, %c0_i32_0, %c0_i32_1, %c0_i32_2 : i32, i32, i32, i32, i32
  }
  func.func @transform_1(%arg0: i32) -> (i32, i32, i32) {
    %c0_i32 = arith.constant 0 : i32
    %c0_i32_0 = arith.constant 0 : i32
    %c0_i32_1 = arith.constant 0 : i32
    return %arg0, %c0_i32, %c0_i32_0 : i32, i32, i32
  }
  func.func @transform_2(%arg0: i32) -> (i32, i32, i32) {
    %c0_i32 = arith.constant 0 : i32
    %c0_i32_0 = arith.constant 0 : i32
    %c0_i32_1 = arith.constant 0 : i32
    return %arg0, %c0_i32, %c0_i32_0 : i32, i32, i32
  }
  func.func @transform_3(%arg0: i32) -> (i32, i32) {
    %c0_i32 = arith.constant 0 : i32
    %c0_i32_0 = arith.constant 0 : i32
    %c0_i32_1 = arith.constant 0 : i32
    return %c0_i32, %c0_i32_0 : i32, i32
  }
  func.func @transform_4(%arg0: i32) -> (i32, i32) {
    %c0_i32 = arith.constant 0 : i32
    %c0_i32_0 = arith.constant 0 : i32
    %c0_i32_1 = arith.constant 0 : i32
    return %c0_i32, %c0_i32_0 : i32, i32
  }
  func.func @transform_5(%arg0: i32) -> (i32, i32, i32) {
    %c0_i32 = arith.constant 0 : i32
    %c0_i32_0 = arith.constant 0 : i32
    %c0_i32_1 = arith.constant 0 : i32
    return %arg0, %c0_i32, %c0_i32_0 : i32, i32, i32
  }
  func.func @transform_6(%arg0: i32) -> (i32, i32, i32, i32) {
    %c0_i32 = arith.constant 0 : i32
    %c0_i32_0 = arith.constant 0 : i32
    %c0_i32_1 = arith.constant 0 : i32
    %c0_i32_2 = arith.constant 0 : i32
    return %arg0, %c0_i32, %c0_i32_0, %c0_i32_1 : i32, i32, i32, i32
  }
}

module attributes {stable_mosaic.version = 11 : i64} {
  func.func @_qkv_proj_kernel(%arg0: i32, %arg1: memref<1x16x128xf32, #tpu.memory_space<vmem>>, %arg2: memref<128x384xbf16, #tpu.memory_space<vmem>>, %arg3: memref<1x384xf32, #tpu.memory_space<vmem>>, %arg4: memref<1x3x2x16x64xbf16, #tpu.memory_space<vmem>>, %arg5: memref<1x16x128xbf16, #tpu.memory_space<vmem>>) attributes {dimension_semantics = [#tpu.dimension_semantics<parallel>], iteration_bounds = array<i64: 2>, scalar_prefetch = 0 : i64, scratch_operands = 0 : i64, tpu.core_type = #tpu.core_type<tc>, window_params = [{transform_indices = @transform_0, window_bounds = array<i64: 1, 16, 128>}, {pipeline_mode = #tpu.pipeline_mode<synchronous>, transform_indices = @transform_1, window_bounds = array<i64: 128, 384>}, {pipeline_mode = #tpu.pipeline_mode<synchronous>, transform_indices = @transform_2, window_bounds = array<i64: 1, 384>}, {transform_indices = @transform_3, window_bounds = array<i64: 1, 3, 2, 16, 64>}, {transform_indices = @transform_4, window_bounds = array<i64: 1, 16, 128>}]} {
    %c0 = arith.constant 0 : index
    %c0_0 = arith.constant 0 : index
    %c0_1 = arith.constant 0 : index
    %0 = vector.load %arg1[%c0, %c0_0, %c0_1] : memref<1x16x128xf32, #tpu.memory_space<vmem>>, vector<1x16x128xf32>
    %1 = vector.shape_cast %0 : vector<1x16x128xf32> to vector<16x128xf32>
    %2 = arith.truncf %1 : vector<16x128xf32> to vector<16x128xbf16>
    %c0_2 = arith.constant 0 : index
    %c0_3 = arith.constant 0 : index
    %3 = vector.load %arg2[%c0_2, %c0_3] : memref<128x384xbf16, #tpu.memory_space<vmem>>, vector<128x384xbf16>
    %cst = arith.constant dense<0.000000e+00> : vector<16x384xf32>
    %4 = tpu.matmul %2, %3, %cst {dimension_numbers = #tpu.dot_dimension_numbers<[1], [0], [0], [1], [0, 0, 1, 1], [], []>} : vector<16x128xbf16>, vector<128x384xbf16>, vector<16x384xf32> -> vector<16x384xf32>
    %c0_4 = arith.constant 0 : index
    %c0_5 = arith.constant 0 : index
    %5 = vector.load %arg3[%c0_4, %c0_5] : memref<1x384xf32, #tpu.memory_space<vmem>>, vector<1x384xf32>
    %6 = vector.broadcast %5 : vector<1x384xf32> to vector<16x384xf32>
    %7 = arith.addf %4, %6 : vector<16x384xf32>
    %8 = arith.truncf %7 : vector<16x384xf32> to vector<16x384xbf16>
    %9 = vector.extract_strided_slice %8 {offsets = [0, 0], sizes = [16, 64], strides = [1, 1]} : vector<16x384xbf16> to vector<16x64xbf16>
    %c0_6 = arith.constant 0 : index
    %c0_7 = arith.constant 0 : index
    %c0_8 = arith.constant 0 : index
    %c0_9 = arith.constant 0 : index
    %c0_10 = arith.constant 0 : index
    %10 = vector.load %arg4[%c0_6, %c0_7, %c0_8, %c0_9, %c0_10] : memref<1x3x2x16x64xbf16, #tpu.memory_space<vmem>>, vector<1x1x1x16x64xbf16>
    %11 = vector.shape_cast %10 : vector<1x1x1x16x64xbf16> to vector<16x64xbf16>
    %12 = vector.shape_cast %9 : vector<16x64xbf16> to vector<1x1x1x16x64xbf16>
    tpu.vector_store %arg4[%c0_6, %c0_7, %c0_8, %c0_9, %c0_10], %12 {strides = array<i32>} : memref<1x3x2x16x64xbf16, #tpu.memory_space<vmem>>, vector<1x1x1x16x64xbf16>,
    %13 = vector.extract_strided_slice %8 {offsets = [0, 64], sizes = [16, 64], strides = [1, 1]} : vector<16x384xbf16> to vector<16x64xbf16>
    %c0_11 = arith.constant 0 : index
    %c0_12 = arith.constant 0 : index
    %c1 = arith.constant 1 : index
    %c0_13 = arith.constant 0 : index
    %c0_14 = arith.constant 0 : index
    %14 = vector.load %arg4[%c0_11, %c0_12, %c1, %c0_13, %c0_14] : memref<1x3x2x16x64xbf16, #tpu.memory_space<vmem>>, vector<1x1x1x16x64xbf16>
    %15 = vector.shape_cast %14 : vector<1x1x1x16x64xbf16> to vector<16x64xbf16>
    %16 = vector.shape_cast %13 : vector<16x64xbf16> to vector<1x1x1x16x64xbf16>
    tpu.vector_store %arg4[%c0_11, %c0_12, %c1, %c0_13, %c0_14], %16 {strides = array<i32>} : memref<1x3x2x16x64xbf16, #tpu.memory_space<vmem>>, vector<1x1x1x16x64xbf16>,
    %17 = vector.extract_strided_slice %8 {offsets = [0, 128], sizes = [16, 64], strides = [1, 1]} : vector<16x384xbf16> to vector<16x64xbf16>
    %c0_15 = arith.constant 0 : index
    %c1_16 = arith.constant 1 : index
    %c0_17 = arith.constant 0 : index
    %c0_18 = arith.constant 0 : index
    %c0_19 = arith.constant 0 : index
    %18 = vector.load %arg4[%c0_15, %c1_16, %c0_17, %c0_18, %c0_19] : memref<1x3x2x16x64xbf16, #tpu.memory_space<vmem>>, vector<1x1x1x16x64xbf16>
    %19 = vector.shape_cast %18 : vector<1x1x1x16x64xbf16> to vector<16x64xbf16>
    %20 = vector.shape_cast %17 : vector<16x64xbf16> to vector<1x1x1x16x64xbf16>
    tpu.vector_store %arg4[%c0_15, %c1_16, %c0_17, %c0_18, %c0_19], %20 {strides = array<i32>} : memref<1x3x2x16x64xbf16, #tpu.memory_space<vmem>>, vector<1x1x1x16x64xbf16>,
    %21 = vector.extract_strided_slice %8 {offsets = [0, 192], sizes = [16, 64], strides = [1, 1]} : vector<16x384xbf16> to vector<16x64xbf16>
    %c0_20 = arith.constant 0 : index
    %c1_21 = arith.constant 1 : index
    %c1_22 = arith.constant 1 : index
    %c0_23 = arith.constant 0 : index
    %c0_24 = arith.constant 0 : index
    %22 = vector.load %arg4[%c0_20, %c1_21, %c1_22, %c0_23, %c0_24] : memref<1x3x2x16x64xbf16, #tpu.memory_space<vmem>>, vector<1x1x1x16x64xbf16>
    %23 = vector.shape_cast %22 : vector<1x1x1x16x64xbf16> to vector<16x64xbf16>
    %24 = vector.shape_cast %21 : vector<16x64xbf16> to vector<1x1x1x16x64xbf16>
    tpu.vector_store %arg4[%c0_20, %c1_21, %c1_22, %c0_23, %c0_24], %24 {strides = array<i32>} : memref<1x3x2x16x64xbf16, #tpu.memory_space<vmem>>, vector<1x1x1x16x64xbf16>,
    %25 = vector.extract_strided_slice %8 {offsets = [0, 256], sizes = [16, 64], strides = [1, 1]} : vector<16x384xbf16> to vector<16x64xbf16>
    %c0_25 = arith.constant 0 : index
    %c2 = arith.constant 2 : index
    %c0_26 = arith.constant 0 : index
    %c0_27 = arith.constant 0 : index
    %c0_28 = arith.constant 0 : index
    %26 = vector.load %arg4[%c0_25, %c2, %c0_26, %c0_27, %c0_28] : memref<1x3x2x16x64xbf16, #tpu.memory_space<vmem>>, vector<1x1x1x16x64xbf16>
    %27 = vector.shape_cast %26 : vector<1x1x1x16x64xbf16> to vector<16x64xbf16>
    %28 = vector.shape_cast %25 : vector<16x64xbf16> to vector<1x1x1x16x64xbf16>
    tpu.vector_store %arg4[%c0_25, %c2, %c0_26, %c0_27, %c0_28], %28 {strides = array<i32>} : memref<1x3x2x16x64xbf16, #tpu.memory_space<vmem>>, vector<1x1x1x16x64xbf16>,
    %29 = vector.extract_strided_slice %8 {offsets = [0, 320], sizes = [16, 64], strides = [1, 1]} : vector<16x384xbf16> to vector<16x64xbf16>
    %c0_29 = arith.constant 0 : index
    %c2_30 = arith.constant 2 : index
    %c1_31 = arith.constant 1 : index
    %c0_32 = arith.constant 0 : index
    %c0_33 = arith.constant 0 : index
    %30 = vector.load %arg4[%c0_29, %c2_30, %c1_31, %c0_32, %c0_33] : memref<1x3x2x16x64xbf16, #tpu.memory_space<vmem>>, vector<1x1x1x16x64xbf16>
    %31 = vector.shape_cast %30 : vector<1x1x1x16x64xbf16> to vector<16x64xbf16>
    %32 = vector.shape_cast %29 : vector<16x64xbf16> to vector<1x1x1x16x64xbf16>
    tpu.vector_store %arg4[%c0_29, %c2_30, %c1_31, %c0_32, %c0_33], %32 {strides = array<i32>} : memref<1x3x2x16x64xbf16, #tpu.memory_space<vmem>>, vector<1x1x1x16x64xbf16>,
    %c0_34 = arith.constant 0 : index
    %c0_35 = arith.constant 0 : index
    %c0_36 = arith.constant 0 : index
    %33 = vector.load %arg5[%c0_34, %c0_35, %c0_36] : memref<1x16x128xbf16, #tpu.memory_space<vmem>>, vector<1x16x128xbf16>
    %34 = vector.shape_cast %33 : vector<1x16x128xbf16> to vector<16x128xbf16>
    %35 = vector.shape_cast %2 : vector<16x128xbf16> to vector<1x16x128xbf16>
    tpu.vector_store %arg5[%c0_34, %c0_35, %c0_36], %35 {strides = array<i32>} : memref<1x16x128xbf16, #tpu.memory_space<vmem>>, vector<1x16x128xbf16>,
    return
  }
  func.func @transform_0(%arg0: i32) -> (i32, i32, i32) {
    %c0_i32 = arith.constant 0 : i32
    %c0_i32_0 = arith.constant 0 : i32
    %c0_i32_1 = arith.constant 0 : i32
    return %arg0, %c0_i32, %c0_i32_0 : i32, i32, i32
  }
  func.func @transform_1(%arg0: i32) -> (i32, i32) {
    %c0_i32 = arith.constant 0 : i32
    %c0_i32_0 = arith.constant 0 : i32
    %c0_i32_1 = arith.constant 0 : i32
    return %c0_i32, %c0_i32_0 : i32, i32
  }
  func.func @transform_2(%arg0: i32) -> (i32, i32) {
    %c0_i32 = arith.constant 0 : i32
    %c0_i32_0 = arith.constant 0 : i32
    %c0_i32_1 = arith.constant 0 : i32
    return %c0_i32, %c0_i32_0 : i32, i32
  }
  func.func @transform_3(%arg0: i32) -> (i32, i32, i32, i32, i32) {
    %c0_i32 = arith.constant 0 : i32
    %c0_i32_0 = arith.constant 0 : i32
    %c0_i32_1 = arith.constant 0 : i32
    %c0_i32_2 = arith.constant 0 : i32
    %c0_i32_3 = arith.constant 0 : i32
    return %arg0, %c0_i32, %c0_i32_0, %c0_i32_1, %c0_i32_2 : i32, i32, i32, i32, i32
  }
  func.func @transform_4(%arg0: i32) -> (i32, i32, i32) {
    %c0_i32 = arith.constant 0 : i32
    %c0_i32_0 = arith.constant 0 : i32
    %c0_i32_1 = arith.constant 0 : i32
    return %arg0, %c0_i32, %c0_i32_0 : i32, i32, i32
  }
}

module attributes {stable_mosaic.version = 11 : i64} {
  func.func @_ffn_kernel(%arg0: i32, %arg1: i32, %arg2: memref<32x128xbf16, #tpu.memory_space<vmem>>, %arg3: memref<128x256xbf16, #tpu.memory_space<vmem>>, %arg4: memref<1x256xf32, #tpu.memory_space<vmem>>, %arg5: memref<256x128xbf16, #tpu.memory_space<vmem>>, %arg6: memref<1x128xf32, #tpu.memory_space<vmem>>, %arg7: memref<32x128xf32, #tpu.memory_space<vmem>>, %arg8: memref<32x128xf32, #tpu.memory_space<vmem>>) attributes {dimension_semantics = [#tpu.dimension_semantics<parallel>, #tpu.dimension_semantics<arbitrary>], iteration_bounds = array<i64: 1, 1>, scalar_prefetch = 0 : i64, scratch_operands = 1 : i64, tpu.core_type = #tpu.core_type<tc>, window_params = [{transform_indices = @transform_0, window_bounds = array<i64: 32, 128>}, {transform_indices = @transform_1, window_bounds = array<i64: 128, 256>}, {transform_indices = @transform_2, window_bounds = array<i64: 1, 256>}, {transform_indices = @transform_3, window_bounds = array<i64: 256, 128>}, {pipeline_mode = #tpu.pipeline_mode<synchronous>, transform_indices = @transform_4, window_bounds = array<i64: 1, 128>}, {transform_indices = @transform_5, window_bounds = array<i64: 32, 128>}]} {
    %c0_i32 = arith.constant 0 : i32
    %0 = arith.cmpi eq, %arg1, %c0_i32 : i32
    %1 = arith.extui %0 : i1 to i32
    %c0_i32_0 = arith.constant 0 : i32
    %2 = arith.cmpi ne, %1, %c0_i32_0 : i32
    scf.if %2 {
      %c0_16 = arith.constant 0 : index
      %c0_17 = arith.constant 0 : index
      %20 = vector.load %arg2[%c0_16, %c0_17] : memref<32x128xbf16, #tpu.memory_space<vmem>>, vector<32x128xbf16>
      %21 = arith.extf %20 : vector<32x128xbf16> to vector<32x128xf32>
      %c0_18 = arith.constant 0 : index
      %c0_19 = arith.constant 0 : index
      %22 = vector.load %arg6[%c0_18, %c0_19] : memref<1x128xf32, #tpu.memory_space<vmem>>, vector<1x128xf32>
      %23 = vector.broadcast %22 : vector<1x128xf32> to vector<32x128xf32>
      %24 = arith.addf %21, %23 : vector<32x128xf32>
      %c0_20 = arith.constant 0 : index
      %c0_21 = arith.constant 0 : index
      %25 = vector.load %arg8[%c0_20, %c0_21] : memref<32x128xf32, #tpu.memory_space<vmem>>, vector<32x128xf32>
      tpu.vector_store %arg8[%c0_20, %c0_21], %24 {strides = array<i32>} : memref<32x128xf32, #tpu.memory_space<vmem>>, vector<32x128xf32>,
    } else {
    }
    %c0 = arith.constant 0 : index
    %c0_1 = arith.constant 0 : index
    %3 = vector.load %arg2[%c0, %c0_1] : memref<32x128xbf16, #tpu.memory_space<vmem>>, vector<32x128xbf16>
    %c0_2 = arith.constant 0 : index
    %c0_3 = arith.constant 0 : index
    %4 = vector.load %arg3[%c0_2, %c0_3] : memref<128x256xbf16, #tpu.memory_space<vmem>>, vector<128x256xbf16>
    %cst = arith.constant dense<0.000000e+00> : vector<32x256xf32>
    %5 = tpu.matmul %3, %4, %cst {dimension_numbers = #tpu.dot_dimension_numbers<[1], [0], [0], [1], [0, 0, 1, 1], [], []>} : vector<32x128xbf16>, vector<128x256xbf16>, vector<32x256xf32> -> vector<32x256xf32>
    %c0_4 = arith.constant 0 : index
    %c0_5 = arith.constant 0 : index
    %6 = vector.load %arg4[%c0_4, %c0_5] : memref<1x256xf32, #tpu.memory_space<vmem>>, vector<1x256xf32>
    %7 = vector.broadcast %6 : vector<1x256xf32> to vector<32x256xf32>
    %8 = arith.addf %5, %7 : vector<32x256xf32>
    %cst_6 = arith.constant 0.000000e+00 : f32
    %9 = vector.broadcast %cst_6 : f32 to vector<32x256xf32>
    %10 = arith.maximumf %8, %9 : vector<32x256xf32>
    %11 = arith.truncf %10 : vector<32x256xf32> to vector<32x256xbf16>
    %c0_7 = arith.constant 0 : index
    %c0_8 = arith.constant 0 : index
    %12 = vector.load %arg8[%c0_7, %c0_8] : memref<32x128xf32, #tpu.memory_space<vmem>>, vector<32x128xf32>
    %c0_9 = arith.constant 0 : index
    %c0_10 = arith.constant 0 : index
    %13 = vector.load %arg5[%c0_9, %c0_10] : memref<256x128xbf16, #tpu.memory_space<vmem>>, vector<256x128xbf16>
    %cst_11 = arith.constant dense<0.000000e+00> : vector<32x128xf32>
    %14 = tpu.matmul %11, %13, %cst_11 {dimension_numbers = #tpu.dot_dimension_numbers<[1], [0], [0], [1], [0, 0, 1, 1], [], []>} : vector<32x256xbf16>, vector<256x128xbf16>, vector<32x128xf32> -> vector<32x128xf32>
    %15 = arith.addf %12, %14 : vector<32x128xf32>
    %c0_12 = arith.constant 0 : index
    %c0_13 = arith.constant 0 : index
    %16 = vector.load %arg8[%c0_12, %c0_13] : memref<32x128xf32, #tpu.memory_space<vmem>>, vector<32x128xf32>
    tpu.vector_store %arg8[%c0_12, %c0_13], %15 {strides = array<i32>} : memref<32x128xf32, #tpu.memory_space<vmem>>, vector<32x128xf32>,
    %c0_i32_14 = arith.constant 0 : i32
    %17 = arith.cmpi eq, %arg1, %c0_i32_14 : i32
    %18 = arith.extui %17 : i1 to i32
    %c0_i32_15 = arith.constant 0 : i32
    %19 = arith.cmpi ne, %18, %c0_i32_15 : i32
    scf.if %19 {
      %c0_16 = arith.constant 0 : index
      %c0_17 = arith.constant 0 : index
      %20 = vector.load %arg8[%c0_16, %c0_17] : memref<32x128xf32, #tpu.memory_space<vmem>>, vector<32x128xf32>
      %cst_18 = arith.constant dense<0.000000e+00> : vector<32xf32>
      %21 = vector.multi_reduction <add>, %20, %cst_18 [1] : vector<32x128xf32> to vector<32xf32>
      %22 = vector.shape_cast %21 : vector<32xf32> to vector<32x1xf32>
      %cst_19 = arith.constant 1.280000e+02 : f32
      %23 = vector.broadcast %cst_19 : f32 to vector<32x1xf32>
      %24 = arith.divf %22, %23 : vector<32x1xf32>
      %25 = vector.broadcast %24 : vector<32x1xf32> to vector<32x128xf32>
      %26 = arith.subf %20, %25 : vector<32x128xf32>
      %27 = arith.mulf %26, %26 : vector<32x128xf32>
      %cst_20 = arith.constant dense<0.000000e+00> : vector<32xf32>
      %28 = vector.multi_reduction <add>, %27, %cst_20 [1] : vector<32x128xf32> to vector<32xf32>
      %29 = vector.shape_cast %28 : vector<32xf32> to vector<32x1xf32>
      %cst_21 = arith.constant 1.280000e+02 : f32
      %30 = vector.broadcast %cst_21 : f32 to vector<32x1xf32>
      %31 = arith.divf %29, %30 : vector<32x1xf32>
      %32 = vector.broadcast %24 : vector<32x1xf32> to vector<32x128xf32>
      %33 = arith.subf %20, %32 : vector<32x128xf32>
      %cst_22 = arith.constant 9.99999974E-6 : f32
      %34 = vector.broadcast %cst_22 : f32 to vector<32x1xf32>
      %35 = arith.addf %31, %34 : vector<32x1xf32>
      %36 = math.rsqrt %35 : vector<32x1xf32>
      %37 = vector.broadcast %36 : vector<32x1xf32> to vector<32x128xf32>
      %38 = arith.mulf %33, %37 : vector<32x128xf32>
      %c0_23 = arith.constant 0 : index
      %c0_24 = arith.constant 0 : index
      %39 = vector.load %arg7[%c0_23, %c0_24] : memref<32x128xf32, #tpu.memory_space<vmem>>, vector<32x128xf32>
      tpu.vector_store %arg7[%c0_23, %c0_24], %38 {strides = array<i32>} : memref<32x128xf32, #tpu.memory_space<vmem>>, vector<32x128xf32>,
    } else {
    }
    return
  }
  func.func @transform_0(%arg0: i32, %arg1: i32) -> (i32, i32) {
    %c0_i32 = arith.constant 0 : i32
    %c0_i32_0 = arith.constant 0 : i32
    return %arg0, %c0_i32 : i32, i32
  }
  func.func @transform_1(%arg0: i32, %arg1: i32) -> (i32, i32) {
    %c0_i32 = arith.constant 0 : i32
    %c0_i32_0 = arith.constant 0 : i32
    return %c0_i32, %arg1 : i32, i32
  }
  func.func @transform_2(%arg0: i32, %arg1: i32) -> (i32, i32) {
    %c0_i32 = arith.constant 0 : i32
    %c0_i32_0 = arith.constant 0 : i32
    return %c0_i32, %arg1 : i32, i32
  }
  func.func @transform_3(%arg0: i32, %arg1: i32) -> (i32, i32) {
    %c0_i32 = arith.constant 0 : i32
    %c0_i32_0 = arith.constant 0 : i32
    return %arg1, %c0_i32 : i32, i32
  }
  func.func @transform_4(%arg0: i32, %arg1: i32) -> (i32, i32) {
    %c0_i32 = arith.constant 0 : i32
    %c0_i32_0 = arith.constant 0 : i32
    %c0_i32_1 = arith.constant 0 : i32
    return %c0_i32, %c0_i32_0 : i32, i32
  }
  func.func @transform_5(%arg0: i32, %arg1: i32) -> (i32, i32) {
    %c0_i32 = arith.constant 0 : i32
    %c0_i32_0 = arith.constant 0 : i32
    return %arg0, %c0_i32 : i32, i32
  }
}

</mosaic_0001>

<bundles_post_ra>
// kernel: encoder_layer.3
= control target key start
LH: loop header
LB: loop body
LE: loop exit
PB: predicated region body
PF: predicated region fallthrough
CT: control target
= control target key end

     0   :  { %s760_s15 = smov 0   ;;  %s962_s0 = inlined_call_operand.vmem [shape: f32[2,16,128], index: 0, kind: input, shape index: {}]   ;;  %s963_s1 = inlined_call_operand.vmem [shape: bf16[128,384], index: 1, kind: input, shape index: {}]   ;;  %s964_s2 = inlined_call_operand.vmem [shape: f32[1,384], index: 2, kind: input, shape index: {}]   ;;  %s965_s3 = inlined_call_operand.vmem [shape: bf16[2,3,2,16,64], index: 3, kind: output, shape index: {0}]   ;;  %s966_s4 = inlined_call_operand.vmem [shape: bf16[2,16,128], index: 4, kind: output, shape index: {1}]  }
   0x1 LB: > { %s567_s16 = sadd.s32 4294967295, %s732_s15   ;;  %p571_p0 = scmp.ge.s32.totalorder %s732_s15, 1  ;;  %s732_s15 = sphi %s760_s15, %s15_s15  }
   0x2   : > { %p165_p1 = scmp.lt.s32.totalorder %s732_s15, 3 }
   0x4   : > { %p166_p2 = pnand %p571_p0, %p165_p1 }
   0x5   : > { %p196_p3 = scmp.lt.s32.totalorder (!%p166_p2), %s567_s16, 1 }
   0x6   : > { %169 = sbr.rel (%p166_p2) target bundleno = 306 (0x132), region = 32 }
   0xb   : > { %v663_v0 = vld [vmem:[%s963_s1 + $0xa8] sm:$0xf]  ;;  %v709_v1 = vld [vmem:[%s963_s1 + $0xb0] sm:$0xf0]  ;;  %v708_v2 = vld [vmem:[%s963_s1 + $0xac] sm:$0xf] }
   0xc   : > { %v664_v3 = vor.u32 %v709_v1, %v663_v0  ;;  %v665_v4 = vld [vmem:[%s963_s1 + $0xb4] sm:$0xf0]  ;;  %v671_v5 = vld [vmem:[%s963_s1 + $0xb0] sm:$0xf]  ;;  %v710_v6 = vld [vmem:[%s963_s1 + $0xb8] sm:$0xf0] }
   0xd   : > { %v668_v7 = vor.u32 %v708_v2, %v665_v4  ;;  %v672_v8 = vor.u32 %v710_v6, %v671_v5  ;;  %v651_v9 = vld [vmem:[%s963_s1 + $0x90] sm:$0xf]  ;;  %v706_v10 = vld [vmem:[%s963_s1 + $0x98] sm:$0xf0]  ;;  %v705_v11 = vld [vmem:[%s963_s1 + $0x94] sm:$0xf] }
   0xe   : > { %389 = vmatpush.bf16.msra.mxu0 %v664_v3  ;;  %v652_v12 = vor.u32 %v706_v10, %v651_v9  ;;  %v653_v13 = vld [vmem:[%s963_s1 + $0x9c] sm:$0xf0]  ;;  %v659_v14 = vld [vmem:[%s963_s1 + $0x98] sm:$0xf]  ;;  %v707_v15 = vld [vmem:[%s963_s1 + $0xa0] sm:$0xf0] }
   0xf   : > { %403 = vmatpush.bf16.msra.mxu1 %v668_v7  ;;  %417 = vmatpush.bf16.msra.mxu2 %v672_v8  ;;  %v656_v16 = vor.u32 %v705_v11, %v653_v13  ;;  %v660_v17 = vor.u32 %v707_v15, %v659_v14  ;;  %v639_v18 = vld [vmem:[%s963_s1 + $0x78] sm:$0xf]  ;;  %v703_v19 = vld [vmem:[%s963_s1 + $0x80] sm:$0xf0]  ;;  %v702_v20 = vld [vmem:[%s963_s1 + $0x7c] sm:$0xf] }
  0x10   : > { %v641_v21 = vld [vmem:[%s963_s1 + $0x84] sm:$0xf0]  ;;  %v647_v22 = vld [vmem:[%s963_s1 + $0x80] sm:$0xf]  ;;  %v704_v23 = vld [vmem:[%s963_s1 + $0x88] sm:$0xf0]  ;;  %v640_v24 = vor.u32 %v703_v19, %v639_v18 }
  0x11   : > { %v644_v25 = vor.u32 %v702_v20, %v641_v21  ;;  %v648_v26 = vor.u32 %v704_v23, %v647_v22  ;;  %v627_v27 = vld [vmem:[%s963_s1 + $0x60] sm:$0xf]  ;;  %v700_v28 = vld [vmem:[%s963_s1 + $0x68] sm:$0xf0]  ;;  %v699_v29 = vld [vmem:[%s963_s1 + $0x64] sm:$0xf] }
  0x12   : > { %390 = vmatpush.bf16.msra.mxu0 %v652_v12  ;;  %v629_v30 = vld [vmem:[%s963_s1 + $0x6c] sm:$0xf0]  ;;  %v635_v31 = vld [vmem:[%s963_s1 + $0x68] sm:$0xf]  ;;  %v701_v32 = vld [vmem:[%s963_s1 + $0x70] sm:$0xf0]  ;;  %v628_v33 = vor.u32 %v700_v28, %v627_v27 }
  0x13   : > { %404 = vmatpush.bf16.msra.mxu1 %v656_v16  ;;  %418 = vmatpush.bf16.msra.mxu2 %v660_v17  ;;  %v632_v34 = vor.u32 %v699_v29, %v629_v30  ;;  %v636_v35 = vor.u32 %v701_v32, %v635_v31  ;;  %v615_v36 = vld [vmem:[%s963_s1 + $0x48] sm:$0xf]  ;;  %v697_v37 = vld [vmem:[%s963_s1 + $0x50] sm:$0xf0]  ;;  %v696_v38 = vld [vmem:[%s963_s1 + $0x4c] sm:$0xf] }
  0x14   : > { %v617_v39 = vld [vmem:[%s963_s1 + $0x54] sm:$0xf0]  ;;  %v623_v40 = vld [vmem:[%s963_s1 + $0x50] sm:$0xf]  ;;  %v698_v41 = vld [vmem:[%s963_s1 + $0x58] sm:$0xf0]  ;;  %v616_v42 = vor.u32 %v697_v37, %v615_v36 }
  0x15   : > { %v603_v43 = vld [vmem:[%s963_s1 + $0x30] sm:$0xf]  ;;  %v620_v44 = vor.u32 %v696_v38, %v617_v39  ;;  %v624_v45 = vor.u32 %v698_v41, %v623_v40  ;;  %v694_v46 = vld [vmem:[%s963_s1 + $0x38] sm:$0xf0]  ;;  %v693_v47 = vld [vmem:[%s963_s1 + $0x34] sm:$0xf] }
  0x16   : > { %391 = vmatpush.bf16.msra.mxu0 %v640_v24  ;;  %v605_v48 = vld [vmem:[%s963_s1 + $0x3c] sm:$0xf0]  ;;  %v611_v49 = vld [vmem:[%s963_s1 + $0x38] sm:$0xf]  ;;  %v695_v50 = vld [vmem:[%s963_s1 + $0x40] sm:$0xf0]  ;;  %v604_v51 = vor.u32 %v694_v46, %v603_v43 }
  0x17   : > { %405 = vmatpush.bf16.msra.mxu1 %v644_v25  ;;  %419 = vmatpush.bf16.msra.mxu2 %v648_v26  ;;  %s968_s16 = smov (!%p196_p3, %s567_s16), 1  ;;  %v591_v52 = vld [vmem:[%s963_s1 + $0x18] sm:$0xf]  ;;  %v691_v53 = vld [vmem:[%s963_s1 + $0x20] sm:$0xf0]  ;;  %v608_v54 = vor.u32 %v693_v47, %v605_v48  ;;  %v612_v55 = vor.u32 %v695_v50, %v611_v49  ;;  %vm435_vm0 = vcmask 519168  }
  0x18   : > { %v690_v56 = vld [vmem:[%s963_s1 + $0x1c] sm:$0xf]  ;;  %v593_v57 = vld [vmem:[%s963_s1 + $0x24] sm:$0xf0]  ;;  %s685_s25 = sshll.u32 %s968_s16, 4  ;;  %s686_s7 = sshll.u32 %s968_s16, 3  ;;  %v592_v62 = vor.u32 %v691_v53, %v591_v52 }
  0x19   : > { %v599_v58 = vld [vmem:[%s963_s1 + $0x20] sm:$0xf]  ;;  %v692_v59 = vld [vmem:[%s963_s1 + $0x28] sm:$0xf0]  ;;  %s200_s6 = scalar_lea.vmem %s962_s0, %s685_s25  ;;  %s210_s10 = scalar_lea.vmem %s966_s4, %s686_s7  ;;  %v596_v2 = vor.u32 %v690_v56, %v593_v57  ;;  %v687_v6 = vld [vmem:[%s963_s1 + $0x4] sm:$0xf] }
  0x1a   : > { %392 = vmatpush.bf16.msra.mxu0 %v628_v33  ;;  %v211_v60 = vld [vmem:[%s200_s6] sm:$0xff]  ;;  %v212_v61 = vld [vmem:[%s200_s6 + $0x8] sm:$0xff]  ;;  %v600_v3 = vor.u32 %v692_v59, %v599_v58  ;;  %v581_v7 = vld [vmem:[%s963_s1 + $0xc] sm:$0xf0]  ;;  %s716_s27 = smul.u32 48, %s968_s16  ;;  %s734_s16 = smov 64  }
  0x1b   : > { %406 = vmatpush.bf16.msra.mxu1 %v632_v34  ;;  %420 = vmatpush.bf16.msra.mxu2 %v636_v35  ;;  %v213_v63 = vpack.c.bf16 %v211_v60, %v211_v60  ;;  %v214_v0 = vpack.c.bf16 %v212_v61, %v212_v61  ;;  %v714_v1 = vpack.c.bf16 %v212_v61, %v211_v60  ;;  %v579_v4 = vld [vmem:[%s963_s1] sm:$0xf]  ;;  %v688_v5 = vld [vmem:[%s963_s1 + $0x8] sm:$0xf0]  ;;  %v587_v8 = vld [vmem:[%s963_s1 + $0x8] sm:$0xf] }
  0x1c   : > { %v689_v9 = vld [vmem:[%s963_s1 + $0x10] sm:$0xf0]  ;;  %v580_v12 = vor.u32 %v688_v5, %v579_v4  ;;  %v584_v13 = vor.u32 %v687_v6, %v581_v7  ;;  %v247_v16 = vld [vmem:[%s964_s2] sm:$0x7]  ;;  %s933_s30 = scalar_lea.vmem %s965_s3, %s716_s27 }
  0x1d   : > { %715 = vst [vmem:[%s210_s10] sm:$0xff] %v714_v1   ;;  %v257_v10 = vunpack.c.l.b16 %v213_v63  ;;  %v258_v11 = vunpack.c.l.b16 %v214_v0  ;;  %v588_v14 = vor.u32 %v689_v9, %v587_v8  ;;  %v249_v17 = vperm.slane %v247_v16, 0 }
  0x1e   : > { %393 = vmatpush.bf16.msra.mxu0 %v616_v42  ;;  %v250_v18 = vperm.slane %v247_v16, 1  ;;  %v251_v24 = vperm.slane %v247_v16, 2 }
  0x1f   : > { %407 = vmatpush.bf16.msra.mxu1 %v620_v44  ;;  %421 = vmatpush.bf16.msra.mxu2 %v624_v45  ;;  %v259_v15 = vpack.c.b16 %v258_v11, %v257_v10 }
  0x22   : > { %394 = vmatpush.bf16.msra.mxu0 %v604_v51 }
  0x23   : > { %408 = vmatpush.bf16.msra.mxu1 %v608_v54  ;;  %422 = vmatpush.bf16.msra.mxu2 %v612_v55 }
  0x26   : > { %395 = vmatpush.bf16.msra.mxu0 %v592_v62 }
  0x27   : > { %409 = vmatpush.bf16.msra.mxu1 %v596_v2  ;;  %423 = vmatpush.bf16.msra.mxu2 %v600_v3 }
  0x2a   : > { %396 = vmatpush.bf16.msra.mxu0 %v580_v12 }
  0x2b   : > { %410 = vmatpush.bf16.msra.mxu1 %v584_v13  ;;  %424 = vmatpush.bf16.msra.mxu2 %v588_v14 }
  0x2d   : > { %397 = vmatmul.bf16.vlgmr.msra.gmra.mxu0 %v259_v15 }
  0x2e   : > { %411 = vmatmul.bf16.vlgmr.msra.gmra.mxu1 %v259_v15  ;;  %425 = vmatmul.bf16.vlgmr.msra.gmra.mxu2 %v259_v15 }
  0xaa   : > { %v398_v19 = vpop.f32.mrf.mxu0 }
  0xab   : > { %v399_v20 = vadd.f32 %v398_v19, %v249_v17  ;;  %v412_v21 = vpop.f32.mrf.mxu1 }
  0xac   : > { %v413_v22 = vadd.f32 %v412_v21, %v250_v18 }
  0xae   : > { %v431_v23 = vpack.c.bf16 %v413_v22, %v399_v20 }
  0xb0   : > { %436 = vst.msk [vmem:[%s933_s30] sm:$0xf] %vm435_vm0, %v431_v23  ;;  %v449_v25 = vrot.slane %v431_v23, 4  ;;  %440 = vrot.lane.b32.xlu0 %v431_v23, %s734_s16 }
  0xb1   : > { %v426_v26 = vpop.f32.mrf.mxu2 }
  0xb2   : > { %675 = vst.msk [vmem:[%s933_s30 + $0x10] sm:$0xf] %vm435_vm0, %v449_v25  ;;  %v427_v27 = vadd.f32 %v426_v26, %v251_v24  ;;  %v400_v28 = vpop.f32.mrf.mxu0 }
  0xb3   : > { %v401_v29 = vadd.f32 %v400_v28, %v249_v17  ;;  %v414_v30 = vpop.f32.mrf.mxu1 }
  0xb4   : > { %v432_v31 = vpack.c.bf16 %v427_v27, %v427_v27  ;;  %v415_v32 = vadd.f32 %v414_v30, %v250_v18 }
  0xb6   : > { %679 = vst.msk [vmem:[%s933_s30 + $0x20] sm:$0xf] %vm435_vm0, %v432_v31  ;;  %v433_v33 = vpack.c.bf16 %v415_v32, %v401_v29  ;;  %468 = vrot.lane.b32.xlu1 %v432_v31, %s734_s16 }
  0xb8   : > { %437 = vst.msk [vmem:[%s933_s30 + $0x4] sm:$0xf] %vm435_vm0, %v433_v33  ;;  %v450_v34 = vrot.slane %v433_v33, 4  ;;  %442 = vrot.lane.b32.xlu0 %v433_v33, %s734_s16 }
  0xb9   : > { %v428_v35 = vpop.f32.mrf.mxu2 }
  0xba   : > { %676 = vst.msk [vmem:[%s933_s30 + $0x14] sm:$0xf] %vm435_vm0, %v450_v34  ;;  %v429_v36 = vadd.f32 %v428_v35, %v251_v24 }
  0xbc   : > { %v434_v37 = vpack.c.bf16 %v429_v36, %v429_v36 }
  0xbe   : > { %680 = vst.msk [vmem:[%s933_s30 + $0x24] sm:$0xf] %vm435_vm0, %v434_v37  ;;  %470 = vrot.lane.b32.xlu1 %v434_v37, %s734_s16 }
 0x122   : > { %v441_v38 = vpop.permute.xlu0 %440 }
 0x123   : > { %673 = vst.msk [vmem:[%s933_s30 + $0x8] sm:$0xf] %vm435_vm0, %v441_v38  ;;  %v456_v39 = vrot.slane %v441_v38, 4 }
 0x125   : > { %677 = vst.msk [vmem:[%s933_s30 + $0x18] sm:$0xf] %vm435_vm0, %v456_v39 }
 0x128   : > { %v469_v40 = vpop.permute.xlu1 %468 }
 0x129   : > { %681 = vst.msk [vmem:[%s933_s30 + $0x28] sm:$0xf] %vm435_vm0, %v469_v40 }
 0x12a   : > { %v443_v41 = vpop.permute.xlu0 %442 }
 0x12b   : > { %674 = vst.msk [vmem:[%s933_s30 + $0xc] sm:$0xf] %vm435_vm0, %v443_v41  ;;  %v457_v42 = vrot.slane %v443_v41, 4 }
 0x12d   : > { %678 = vst.msk [vmem:[%s933_s30 + $0x1c] sm:$0xf] %vm435_vm0, %v457_v42 }
 0x130   : > { %v471_v43 = vpop.permute.xlu1 %470 }
 0x131   : > { %682 = vst.msk [vmem:[%s933_s30 + $0x2c] sm:$0xf] %vm435_vm0, %v471_v43 }
 0x132 PF: > { %s15_s15 = sadd.s32 1, %s732_s15  }
 0x133   : > { %p12_p4 = scmp.ge.s32.totalorder %s15_s15, 4  }
 0x135   :  { %14 = sbr.rel (!%p12_p4) target bundleno = 1 (0x1), region = 79 }

// kernel: encoder_layer.5
= control target key start
LH: loop header
LB: loop body
LE: loop exit
PB: predicated region body
PF: predicated region fallthrough
CT: control target
= control target key end

     0   :  { %s931_s0 = inlined_call_operand.vmem [shape: bf16[32,128], index: 0, kind: input, shape index: {}]   ;;  %s932_s1 = inlined_call_operand.vmem [shape: bf16[128,256], index: 1, kind: input, shape index: {}]   ;;  %s933_s2 = inlined_call_operand.vmem [shape: f32[1,256], index: 2, kind: input, shape index: {}]   ;;  %s934_s3 = inlined_call_operand.vmem [shape: bf16[256,128], index: 3, kind: input, shape index: {}]   ;;  %s935_s4 = inlined_call_operand.vmem [shape: f32[1,128], index: 4, kind: input, shape index: {}]   ;;  %s936_s5 = inlined_call_operand.hbm [shape: f32[32,128], index: 5, kind: output, shape index: {}]  }
   0x1   :  { %v573_v0 = vld [vmem:[%s932_s1 + $0x70] sm:$0xf]  ;;  %v660_v1 = vld [vmem:[%s932_s1 + $0x74] sm:$0xf0]  ;;  %v659_v2 = vld [vmem:[%s932_s1 + $0x74] sm:$0xf] }
   0x2   :  { %v574_v3 = vor.u32 %v660_v1, %v573_v0  ;;  %v575_v4 = vld [vmem:[%s932_s1 + $0x78] sm:$0xf0]  ;;  %v565_v5 = vld [vmem:[%s932_s1 + $0x60] sm:$0xf]  ;;  %v658_v6 = vld [vmem:[%s932_s1 + $0x64] sm:$0xf0] }
   0x3   :  { %v578_v7 = vor.u32 %v659_v2, %v575_v4  ;;  %v657_v8 = vld [vmem:[%s932_s1 + $0x64] sm:$0xf]  ;;  %v567_v9 = vld [vmem:[%s932_s1 + $0x68] sm:$0xf0]  ;;  %v566_v10 = vor.u32 %v658_v6, %v565_v5  ;;  %v557_v12 = vld [vmem:[%s932_s1 + $0x50] sm:$0xf] }
   0x4   :  { %163 = vmatpush.bf16.msra.mxu0 %v574_v3  ;;  %v570_v11 = vor.u32 %v657_v8, %v567_v9  ;;  %v656_v13 = vld [vmem:[%s932_s1 + $0x54] sm:$0xf0]  ;;  %v655_v14 = vld [vmem:[%s932_s1 + $0x54] sm:$0xf]  ;;  %v559_v15 = vld [vmem:[%s932_s1 + $0x58] sm:$0xf0] }
   0x5   :  { %182 = vmatpush.bf16.msra.mxu1 %v578_v7  ;;  %v558_v16 = vor.u32 %v656_v13, %v557_v12  ;;  %v562_v17 = vor.u32 %v655_v14, %v559_v15  ;;  %v549_v18 = vld [vmem:[%s932_s1 + $0x40] sm:$0xf]  ;;  %v654_v19 = vld [vmem:[%s932_s1 + $0x44] sm:$0xf0]  ;;  %v653_v20 = vld [vmem:[%s932_s1 + $0x44] sm:$0xf] }
   0x6   :  { %v551_v21 = vld [vmem:[%s932_s1 + $0x48] sm:$0xf0]  ;;  %v550_v22 = vor.u32 %v654_v19, %v549_v18 }
   0x8   :  { %164 = vmatpush.bf16.msra.mxu0 %v566_v10 }
   0x9   :  { %183 = vmatpush.bf16.msra.mxu1 %v570_v11 }
   0xc   :  { %165 = vmatpush.bf16.msra.mxu0 %v558_v16 }
   0xd   :  { %10 = vsyncpa [#allocation4], 0  ;;  %184 = vmatpush.bf16.msra.mxu1 %v562_v17  ;;  %v554_v23 = vor.u32 %v653_v20, %v551_v21  ;;  %v541_v24 = vld [vmem:[%s932_s1 + $0x30] sm:$0xf]  ;;  %v652_v25 = vld [vmem:[%s932_s1 + $0x34] sm:$0xf0] }
   0xe   :  { %v651_v26 = vld [vmem:[%s932_s1 + $0x34] sm:$0xf]  ;;  %v543_v27 = vld [vmem:[%s932_s1 + $0x38] sm:$0xf0]  ;;  %v542_v28 = vor.u32 %v652_v25, %v541_v24  ;;  %v533_v30 = vld [vmem:[%s932_s1 + $0x20] sm:$0xf] }
   0xf   :  { %v546_v29 = vor.u32 %v651_v26, %v543_v27  ;;  %v650_v31 = vld [vmem:[%s932_s1 + $0x24] sm:$0xf0]  ;;  %v649_v32 = vld [vmem:[%s932_s1 + $0x24] sm:$0xf]  ;;  %v535_v33 = vld [vmem:[%s932_s1 + $0x28] sm:$0xf0] }
  0x10   :  { %166 = vmatpush.bf16.msra.mxu0 %v550_v22  ;;  %v534_v34 = vor.u32 %v650_v31, %v533_v30  ;;  %v668_v35 = vld [vmem:[%s934_s3 + $0x38] sm:$0xff]  ;;  %v538_v37 = vor.u32 %v649_v32, %v535_v33  ;;  %v525_v38 = vld [vmem:[%s932_s1 + $0x10] sm:$0xf]  ;;  %v647_v40 = vld [vmem:[%s932_s1 + $0x14] sm:$0xf]  ;;  %s495_s24 = sshll.u32 %s936_s5, 4  ;;  %s496_s24 = int_to_ptr.hbm [resolvable:$true] %s495_s24 }
  0x11   :  { %185 = vmatpush.bf16.msra.mxu1 %v554_v23  ;;  %v676_v36 = vld [vmem:[%s934_s3 + $0x78] sm:$0xff]  ;;  %345 = vmatpush.bf16.msra.mxu2 %v668_v35  ;;  %v667_v42 = vld [vmem:[%s934_s3 + $0x30] sm:$0xff]  ;;  %v517_v46 = vld [vmem:[%s932_s1] sm:$0xf]  ;;  %s729_s25 = smov 128   ;;  %s730_s26 = smov 8  }
  0x12   :  { %v648_v39 = vld [vmem:[%s932_s1 + $0x14] sm:$0xf0]  ;;  %v527_v41 = vld [vmem:[%s932_s1 + $0x18] sm:$0xf0]  ;;  %364 = vmatpush.bf16.msra.mxu3 %v676_v36  ;;  %v675_v43 = vld [vmem:[%s934_s3 + $0x70] sm:$0xff] }
  0x13   :  { %v526_v44 = vor.u32 %v648_v39, %v525_v38  ;;  %v530_v45 = vor.u32 %v647_v40, %v527_v41  ;;  %v646_v47 = vld [vmem:[%s932_s1 + $0x4] sm:$0xf0]  ;;  %v645_v48 = vld [vmem:[%s932_s1 + $0x4] sm:$0xf]  ;;  %v519_v49 = vld [vmem:[%s932_s1 + $0x8] sm:$0xf0] }
  0x14   :  { %167 = vmatpush.bf16.msra.mxu0 %v542_v28  ;;  %v666_v50 = vld [vmem:[%s934_s3 + $0x28] sm:$0xff]  ;;  %v518_v52 = vor.u32 %v646_v47, %v517_v46  ;;  %v522_v53 = vor.u32 %v645_v48, %v519_v49  ;;  %v665_v54 = vld [vmem:[%s934_s3 + $0x20] sm:$0xff]  ;;  %v664_v58 = vld [vmem:[%s934_s3 + $0x18] sm:$0xff] }
  0x15   :  { %186 = vmatpush.bf16.msra.mxu1 %v546_v29  ;;  %346 = vmatpush.bf16.msra.mxu2 %v667_v42  ;;  %v674_v51 = vld [vmem:[%s934_s3 + $0x68] sm:$0xff]  ;;  %v673_v55 = vld [vmem:[%s934_s3 + $0x60] sm:$0xff]  ;;  %v672_v59 = vld [vmem:[%s934_s3 + $0x58] sm:$0xff] }
  0x16   :  { %365 = vmatpush.bf16.msra.mxu3 %v675_v43  ;;  %v643_v56 = vld [vmem:[%s931_s0] sm:$0xff]  ;;  %v644_v57 = vld [vmem:[%s931_s0 + $0x8] sm:$0xff]  ;;  %v663_v60 = vld [vmem:[%s934_s3 + $0x10] sm:$0xff] }
  0x17   :  { %v671_v61 = vld [vmem:[%s934_s3 + $0x50] sm:$0xff]  ;;  %v662_v62 = vld [vmem:[%s934_s3 + $0x8] sm:$0xff]  ;;  %v661_v0 = vld [vmem:[%s934_s3] sm:$0xff] }
  0x18   :  { %168 = vmatpush.bf16.msra.mxu0 %v534_v34  ;;  %v670_v63 = vld [vmem:[%s934_s3 + $0x48] sm:$0xff]  ;;  %v669_v1 = vld [vmem:[%s934_s3 + $0x40] sm:$0xff] }
  0x19   :  { %187 = vmatpush.bf16.msra.mxu1 %v538_v37  ;;  %347 = vmatpush.bf16.msra.mxu2 %v666_v50  ;;  %v65_v2 = vld [vmem:[%s933_s2] sm:$0x3] }
  0x1a   :  { %366 = vmatpush.bf16.msra.mxu3 %v674_v51  ;;  %v67_v5 = vperm.slane %v65_v2, 0  ;;  %v68_v6 = vperm.slane %v65_v2, 1  ;;  %v678_v33 = vld [vmem:[%s931_s0] sm:$0xff]  }
  0x1b   :  { %v679_v34 = vunpack.c.l.bf16 %v678_v33  ;;  %v690_v35 = vld [vmem:[%s935_s4] ss:$0 sm:$0xff]  ;;  %v680_v41 = vunpack.c.h.bf16 %v678_v33 }
  0x1c   :  { %169 = vmatpush.bf16.msra.mxu0 %v526_v44 }
  0x1d   :  { %188 = vmatpush.bf16.msra.mxu1 %v530_v45  ;;  %348 = vmatpush.bf16.msra.mxu2 %v665_v54  ;;  %v37_v37 = vadd.f32 %v690_v35, %v679_v34  ;;  %v38_v43 = vadd.f32 %v690_v35, %v680_v41  ;;  %v685_v45 = vld [vmem:[%s931_s0 + $0x8] sm:$0xff]   ;;  %s728_s0 = smov [#allocation3]  }
  0x1e   :  { %367 = vmatpush.bf16.msra.mxu3 %v673_v55  ;;  %v683_v48 = vunpack.c.l.bf16 %v685_v45  ;;  %v684_v54 = vunpack.c.h.bf16 %v685_v45  ;;  %s493_s4 = sshll.u32 %s728_s0, 4  ;;  %s494_s4 = int_to_ptr.vmem [resolvable:$true] %s493_s4 }
  0x20   :  { %170 = vmatpush.bf16.msra.mxu0 %v518_v52  ;;  %v39_v50 = vadd.f32 %v690_v35, %v683_v48 }
  0x21   :  { %189 = vmatpush.bf16.msra.mxu1 %v522_v53  ;;  %349 = vmatpush.bf16.msra.mxu2 %v664_v58 }
  0x22   :  { %368 = vmatpush.bf16.msra.mxu3 %v672_v59 }
  0x23   :  { %171 = vmatmul.bf16.vlgmr.msra.gmra.mxu0 %v643_v56 }
  0x24   :  { %190 = vmatmul.bf16.vlgmr.msra.gmra.mxu1 %v643_v56  ;;  %v40_v56 = vadd.f32 %v690_v35, %v684_v54 }
  0x25   :  { %350 = vmatpush.bf16.msra.mxu2 %v663_v60  ;;  %v727_v60 = vmov 128.0  }
  0x26   :  { %369 = vmatpush.bf16.msra.mxu3 %v671_v61  ;;  %691 = vrcp.f32 %v727_v60 }
  0x29   :  { %351 = vmatpush.bf16.msra.mxu2 %v662_v62 }
  0x2a   :  { %370 = vmatpush.bf16.msra.mxu3 %v670_v63 }
  0x2c   :  { %v692_v61 = vpop.eup %691 }
  0x2d   :  { %352 = vmatpush.bf16.msra.mxu2 %v661_v0  ;;  %v407_v62 = vmul.f32 128.0, %v692_v61  ;;  %vm411_vm0 = vweird.f32 %v692_v61 }
  0x2e   :  { %371 = vmatpush.bf16.msra.mxu3 %v669_v1 }
  0x2f   :  { %v408_v63 = vsub.f32 1.0, %v407_v62 }
  0x31   :  { %v409_v0 = vmul.f32 %v692_v61, %v408_v63 }
  0x33   :  { %176 = vmatmul.bf16.gmra.mxu0 %v644_v57  ;;  %v410_v1 = vadd.f32 %v692_v61, %v409_v0 }
  0x34   :  { %195 = vmatmul.bf16.gmra.mxu1 %v644_v57 }
  0x35   :  { %v412_v2 = vsel %vm411_vm0, %v692_v61, %v410_v1 }
  0xa0   :  { %v172_v3 = vpop.f32.mrf.mxu0 }
  0xa1   :  { %v191_v4 = vpop.f32.mrf.mxu1  ;;  %v173_v7 = vadd.f32 %v172_v3, %v67_v5 }
  0xa2   :  { %v192_v8 = vadd.f32 %v191_v4, %v68_v6 }
  0xa3   :  { %v201_v13 = vmax.f32 %v173_v7, 0.0 }
  0xa4   :  { %v202_v15 = vmax.f32 %v192_v8, 0.0 }
  0xa8   :  { %v174_v9 = vpop.f32.mrf.mxu0 }
  0xa9   :  { %v175_v10 = vadd.f32 %v174_v9, %v67_v5  ;;  %v193_v11 = vpop.f32.mrf.mxu1 }
  0xaa   :  { %v194_v12 = vadd.f32 %v193_v11, %v68_v6 }
  0xab   :  { %v203_v14 = vmax.f32 %v175_v10, 0.0 }
  0xac   :  { %v204_v16 = vmax.f32 %v194_v12, 0.0 }
  0xad   :  { %v209_v17 = vpack.c.bf16 %v203_v14, %v201_v13 }
  0xae   :  { %v210_v18 = vpack.c.bf16 %v204_v16, %v202_v15 }
  0xaf   :  { %353 = vmatmul.bf16.vlgmr.msra.gmra.mxu2 %v209_v17 }
  0xb0   :  { %372 = vmatmul.bf16.vlgmr.msra.gmra.mxu3 %v210_v18  ;;  %v177_v19 = vpop.f32.mrf.mxu0 }
  0xb1   :  { %v196_v20 = vpop.f32.mrf.mxu1  ;;  %v178_v21 = vadd.f32 %v177_v19, %v67_v5 }
  0xb2   :  { %v197_v22 = vadd.f32 %v196_v20, %v68_v6 }
  0xb3   :  { %v205_v27 = vmax.f32 %v178_v21, 0.0 }
  0xb4   :  { %v206_v29 = vmax.f32 %v197_v22, 0.0 }
  0xb8   :  { %v179_v23 = vpop.f32.mrf.mxu0 }
  0xb9   :  { %v180_v24 = vadd.f32 %v179_v23, %v67_v5  ;;  %v198_v25 = vpop.f32.mrf.mxu1 }
  0xba   :  { %v199_v26 = vadd.f32 %v198_v25, %v68_v6 }
  0xbb   :  { %v207_v28 = vmax.f32 %v180_v24, 0.0 }
  0xbc   :  { %v208_v30 = vmax.f32 %v199_v26, 0.0 }
  0xbd   :  { %v211_v31 = vpack.c.bf16 %v207_v28, %v205_v27 }
  0xbe   :  { %v212_v32 = vpack.c.bf16 %v208_v30, %v206_v29 }
  0xbf   :  { %358 = vmatmul.bf16.gmra.mxu2 %v211_v31 }
  0xc0   :  { %377 = vmatmul.bf16.gmra.mxu3 %v212_v32 }
 0x132   :  { %v354_v36 = vpop.f32.mrf.mxu2 }
 0x133   :  { %v373_v38 = vpop.f32.mrf.mxu3 }
 0x134   :  { %v374_v39 = vadd.f32 %v373_v38, %v354_v36 }
 0x136   :  { %v383_v40 = vadd.f32 %v374_v39, %v37_v37 }
 0x138   :  { %398 = vadd.xlane.f32.xlu0 %v383_v40 }
 0x13a   :  { %v356_v42 = vpop.f32.mrf.mxu2 }
 0x13b   :  { %v375_v44 = vpop.f32.mrf.mxu3 }
 0x13c   :  { %v376_v46 = vadd.f32 %v375_v44, %v356_v42 }
 0x13e   :  { %v384_v47 = vadd.f32 %v376_v46, %v38_v43 }
 0x140   :  { %400 = vadd.xlane.f32.xlu0 %v384_v47 }
 0x142   :  { %v359_v49 = vpop.f32.mrf.mxu2 }
 0x143   :  { %v378_v51 = vpop.f32.mrf.mxu3 }
 0x144   :  { %v379_v52 = vadd.f32 %v378_v51, %v359_v49 }
 0x146   :  { %v385_v53 = vadd.f32 %v379_v52, %v39_v50 }
 0x148   :  { %402 = vadd.xlane.f32.xlu1 %v385_v53 }
 0x14a   :  { %v361_v55 = vpop.f32.mrf.mxu2 }
 0x14b   :  { %v380_v57 = vpop.f32.mrf.mxu3 }
 0x14c   :  { %v381_v58 = vadd.f32 %v380_v57, %v361_v55 }
 0x14e   :  { %v386_v59 = vadd.f32 %v381_v58, %v40_v56 }
 0x150   :  { %404 = vadd.xlane.f32.xlu1 %v386_v59 }
 0x1ab   :  { %v399_v3 = vpop.xlane.xlu0 %398 }
 0x1ac   :  { %v413_v4 = vmul.f32 %v412_v2, %v399_v3 }
 0x1ae   :  { %v417_v5 = vsub.f32 %v383_v40, %v413_v4 }
 0x1b0   :  { %v421_v6 = vmul.f32 %v417_v5, %v417_v5 }
 0x1b2   :  { %425 = vadd.xlane.f32.xlu2 %v421_v6 }
 0x1b3   :  { %v401_v7 = vpop.xlane.xlu0 %400 }
 0x1b4   :  { %v414_v8 = vmul.f32 %v412_v2, %v401_v7 }
 0x1b6   :  { %v418_v9 = vsub.f32 %v384_v47, %v414_v8 }
 0x1b8   :  { %v422_v10 = vmul.f32 %v418_v9, %v418_v9 }
 0x1ba   :  { %427 = vadd.xlane.f32.xlu2 %v422_v10 }
 0x1bb   :  { %v403_v11 = vpop.xlane.xlu1 %402 }
 0x1bc   :  { %v415_v12 = vmul.f32 %v412_v2, %v403_v11 }
 0x1be   :  { %v419_v13 = vsub.f32 %v385_v53, %v415_v12 }
 0x1c0   :  { %v423_v14 = vmul.f32 %v419_v13, %v419_v13 }
 0x1c2   :  { %429 = vadd.xlane.f32.xlu0 %v423_v14 }
 0x1c3   :  { %v405_v15 = vpop.xlane.xlu1 %404 }
 0x1c4   :  { %v416_v16 = vmul.f32 %v412_v2, %v405_v15 }
 0x1c6   :  { %v923_v17 = vsub.f32 %v386_v59, %v416_v16 }
 0x1c8   :  { %v424_v18 = vmul.f32 %v923_v17, %v923_v17 }
 0x1ca   :  { %431 = vadd.xlane.f32.xlu1 %v424_v18 }
 0x225   :  { %v426_v19 = vpop.xlane.xlu2 %425 }
 0x226   :  { %v433_v20 = vmul.f32 %v426_v19, %v412_v2 }
 0x228   :  { %v437_v21 = vadd.f32 1e-05, %v433_v20 }
 0x22a   :  { %693 = vrsqrt.f32 %v437_v21  ;;  %vm447_vm2 = vweird.f32 %v437_v21 }
 0x22d   :  { %v428_v22 = vpop.xlane.xlu2 %427 }
 0x22e   :  { %v434_v23 = vmul.f32 %v428_v22, %v412_v2 }
 0x230   :  { %v694_v24 = vpop.eup %693  ;;  %v438_v25 = vadd.f32 1e-05, %v434_v23 }
 0x231   :  { %v442_v26 = vmul.f32 %v694_v24, %v437_v21  ;;  %vm448_vm1 = vweird.f32 %v694_v24 }
 0x232   :  { %695 = vrsqrt.f32 %v438_v25  ;;  %vm449_vm3 = vmor %vm447_vm2, %vm448_vm1  ;;  %vm457_vm5 = vweird.f32 %v438_v25 }
 0x233   :  { %v443_v27 = vmul.f32 %v694_v24, %v442_v26 }
 0x235   :  { %v444_v28 = vmul.f32 0.5, %v443_v27  ;;  %v430_v29 = vpop.xlane.xlu0 %429 }
 0x236   :  { %v435_v30 = vmul.f32 %v430_v29, %v412_v2 }
 0x237   :  { %v445_v31 = vsub.f32 1.5, %v444_v28 }
 0x238   :  { %v696_v32 = vpop.eup %695  ;;  %v439_v33 = vadd.f32 1e-05, %v435_v30 }
 0x239   :  { %v446_v34 = vmul.f32 %v694_v24, %v445_v31  ;;  %v452_v35 = vmul.f32 %v696_v32, %v438_v25  ;;  %vm458_vm4 = vweird.f32 %v696_v32 }
 0x23a   :  { %697 = vrsqrt.f32 %v439_v33  ;;  %vm459_vm6 = vmor %vm457_vm5, %vm458_vm4  ;;  %vm467_vm8 = vweird.f32 %v439_v33 }
 0x23b   :  { %v450_v36 = vsel %vm449_vm3, %v694_v24, %v446_v34  ;;  %v453_v37 = vmul.f32 %v696_v32, %v452_v35 }
 0x23c   :  { %v481_v38 = vmul.f32 %v450_v36, %v417_v5 }
 0x23d   :  { %v454_v39 = vmul.f32 0.5, %v453_v37  ;;  %v432_v40 = vpop.xlane.xlu1 %431 }
 0x23e   :  { %485 = vst [vmem:[#allocation3] sm:$0xff] %v481_v38  ;;  %v436_v41 = vmul.f32 %v432_v40, %v412_v2 }
 0x23f   :  { %v455_v42 = vsub.f32 1.5, %v454_v39 }
 0x240   :  { %v698_v43 = vpop.eup %697  ;;  %v440_v44 = vadd.f32 1e-05, %v436_v41 }
 0x241   :  { %v456_v45 = vmul.f32 %v696_v32, %v455_v42  ;;  %v462_v46 = vmul.f32 %v698_v43, %v439_v33  ;;  %vm468_vm7 = vweird.f32 %v698_v43 }
 0x242   :  { %699 = vrsqrt.f32 %v440_v44  ;;  %vm469_vm9 = vmor %vm467_vm8, %vm468_vm7  ;;  %vm477_vm11 = vweird.f32 %v440_v44 }
 0x243   :  { %v460_v47 = vsel %vm459_vm6, %v696_v32, %v456_v45  ;;  %v463_v48 = vmul.f32 %v698_v43, %v462_v46 }
 0x244   :  { %v482_v49 = vmul.f32 %v460_v47, %v418_v9 }
 0x245   :  { %v464_v50 = vmul.f32 0.5, %v463_v48 }
 0x246   :  { %486 = vst [vmem:[#allocation3 + $0x8] sm:$0xff] %v482_v49 }
 0x247   :  { %v465_v51 = vsub.f32 1.5, %v464_v50 }
 0x248   :  { %v700_v52 = vpop.eup %699 }
 0x249   :  { %v466_v53 = vmul.f32 %v698_v43, %v465_v51  ;;  %v472_v54 = vmul.f32 %v700_v52, %v440_v44  ;;  %vm478_vm10 = vweird.f32 %v700_v52 }
 0x24a   :  { %vm479_vm12 = vmor %vm477_vm11, %vm478_vm10 }
 0x24b   :  { %v470_v55 = vsel %vm469_vm9, %v698_v43, %v466_v53  ;;  %v473_v56 = vmul.f32 %v700_v52, %v472_v54 }
 0x24c   :  { %v483_v57 = vmul.f32 %v470_v55, %v419_v13 }
 0x24d   :  { %v474_v58 = vmul.f32 0.5, %v473_v56 }
 0x24e   :  { %487 = vst [vmem:[#allocation3 + $0x10] sm:$0xff] %v483_v57 }
 0x24f   :  { %v475_v59 = vsub.f32 1.5, %v474_v58 }
 0x251   :  { %v476_v60 = vmul.f32 %v700_v52, %v475_v59 }
 0x253   :  { %v480_v61 = vsel %vm479_vm12, %v700_v52, %v476_v60 }
 0x254   :  { %v484_v62 = vmul.f32 %v480_v61, %v923_v17 }
 0x256   :  { %488 = vst [vmem:[#allocation3 + $0x18] sm:$0xff] %v484_v62 }
 0x257   :  { %501 = dma.vmem_to_hbm [thread:$0]  %s494_s4, 512, %s496_s24, [#allocation4], %s729_s25, %s729_s25, %s730_s26  }
 0x258   :  { %725 = dma.done.wait [#allocation4], 512  }
 0x259   :  { %726 = vsyncadd [#allocation4], 4294966784 }
 0x25a   :  { %506 = vsyncpa [#allocation4], 1 }

// kernel: encoder_layer.4
= control target key start
LH: loop header
LB: loop body
LE: loop exit
PB: predicated region body
PF: predicated region fallthrough
CT: control target
= control target key end

     0   :  { %12 = vsyncpa [#allocation3], 0  ;;  %s1238_s0 = inlined_call_operand.vmem [shape: bf16[2,3,2,16,64], index: 0, kind: input, shape index: {}]   ;;  %s1239_s1 = inlined_call_operand.vmem [shape: bf16[2,16,16], index: 1, kind: input, shape index: {}]   ;;  %s1240_s2 = inlined_call_operand.vmem [shape: bf16[2,16,128], index: 2, kind: input, shape index: {}]   ;;  %s1241_s3 = inlined_call_operand.vmem [shape: bf16[128,128], index: 3, kind: input, shape index: {}]   ;;  %s1242_s4 = inlined_call_operand.vmem [shape: f32[1,128], index: 4, kind: input, shape index: {}]   ;;  %s1243_s5 = inlined_call_operand.vmem [shape: bf16[2,16,128], index: 5, kind: output, shape index: {0}]   ;;  %s1244_s6 = inlined_call_operand.hbm [shape: bf16[2,2,16,16], index: 6, kind: output, shape index: {1}]  }
   0x1   :  { %14 = vsyncpa [#allocation3 + $0x1], 0  ;;  %s1071_s21 = smov 0   ;;  %s1073_s22 = smov 0  }
   0x2   :  { %s1075_s23 = smov 0   ;;  %s1077_s24 = smov 0  }
   0x3 LB: > { %s1092_s25 = sadd.s32 4294967295, %s1031_s24   ;;  %s787_s26 = sadd.s32 4294967294, %s1031_s24   ;;  %s1031_s24 = sphi %s1077_s24, %s1252_s24   ;;  %s1027_s23 = sphi %s1075_s23, %s1251_s23   ;;  %s1023_s22 = sphi %s1073_s22, %s1250_s22   ;;  %s1019_s21 = sphi %s1071_s21, %s1249_s21  }
   0x4   : > { %s1096_s27 = sadd.s32 1, %s1031_s24   ;;  %s173_s28 = sadd.s32 1, %s1027_s23 }
   0x5   : > { %s170_s29 = ssub.s32 %s1031_s24, %s1096_s27  ;;  %p183_p0 = scmp.ne.s32.totalorder %s1027_s23, %s1023_s22 }
   0x6   : > { %p171_p1 = scmp.eq.s32.totalorder %s170_s29, 0  ;;  %p184_p2 = scmp.eq.s32.totalorder %s1092_s25, 1 }
   0x7   : > { %p189_p3 = scmp.ne.s32.totalorder %s1023_s22, %s1019_s21  ;;  %p190_p4 = scmp.eq.s32.totalorder %s787_s26, 1 }
   0x8   : > { %s1107_s30 = scalar_select %p171_p1, %s1027_s23, %s173_s28  }
   0x9   : > { %p1109_p5 = por %p184_p2, %p183_p0  ;;  %p1113_p6 = por %p190_p4, %p189_p3 }
   0xa   : > { %p790_p7 = scmp.ge.s32.totalorder %s1031_s24, 1  ;;  %p238_p8 = scmp.lt.s32.totalorder %s1031_s24, 3 }
   0xc   : > { %p239_p9 = pnand %p790_p7, %p238_p8 }
   0xd   : > { %p283_p10 = scmp.lt.s32.totalorder (!%p239_p9), %s1092_s25, 1  ;;  %s280_s18 = sand.u32 (!%p239_p9), 1, %s1023_s22  }
   0xe   : > { %242 = sbr.rel (%p239_p9) target bundleno = 1093 (0x445), region = 40  ;;  %s791_s19 = sshll.u32 (!%p239_p9), %s280_s18, 4 }
   0xf   : > { %s1153_s20 = scalar_lea.vmem (!%p239_p9), [#allocation2], %s791_s19  ;;  %s658_s11 = scalar_lea.sflag (!%p239_p9), [#allocation3], %s280_s18 }
  0x10   : > { %s673_s29 = sshll.u32 (!%p239_p9), %s1153_s20, 4  ;;  %s674_s29 = int_to_ptr.vmem [resolvable:$true] %s673_s29 }
  0x13   : > { %s284_s9 = scalar_select %p283_p10, %s1092_s25, 1  ;;  %vm332_vm0 = vcmask 523264   ;;  %vm383_vm1 = vcmask 130048   ;;  %vm432_vm2 = vcmask 125952  }
  0x15   : > { %s903_s10 = smul.u32 48, %s284_s9  ;;  %s1134_s14 = sshll.u32 %s284_s9, 3 }
  0x16   : > { %s292_s17 = scalar_lea.vmem %s1239_s1, %s1134_s14 }
  0x17   : > { %s1124_s13 = scalar_lea.vmem %s1238_s0, %s903_s10  ;;  %v891_v6 = vld [vmem:[%s292_s17] sm:$0xff]   ;;  %s1245_s10 = smov 64  }
  0x18   : > { %v877_v0 = vld [vmem:[%s1124_s13 + $0x10] sm:$0xff]  ;;  %v878_v1 = vld [vmem:[%s1124_s13 + $0x18] sm:$0xff]  ;;  %v875_v4 = vld [vmem:[%s1124_s13] sm:$0xff]  ;;  %v892_v7 = vunpack.c.l.bf16 %v891_v6  ;;  %v893_v14 = vunpack.c.h.bf16 %v891_v6  ;;  %s889_s17 = sshll.u32 %s1092_s25, 4  ;;  %s989_s25 = scalar_lea.hbm %s1244_s6, 32 }
  0x19   : > { %v337_v2 = vsel %vm332_vm0, %v877_v0, 0  ;;  %v367_v3 = vsel %vm332_vm0, %v878_v1, 0  ;;  %v876_v5 = vld [vmem:[%s1124_s13 + $0x8] sm:$0xff]  ;;  %v879_v41 = vld [vmem:[%s1124_s13 + $0x20] sm:$0xff]  ;;  %v888_v1 = vld [vmem:[%s1241_s3 + $0x38] sm:$0xff]  ;;  %s672_s28 = scalar_lea.hbm %s1244_s6, %s889_s17 }
  0x1a   : > { %346 = vmatpush.bf16.xpose.msra.mxu0 %v337_v2  ;;  %376 = vmatpush.bf16.xpose.msra.mxu1 %v367_v3  ;;  %v880_v42 = vld [vmem:[%s1124_s13 + $0x28] sm:$0xff]  ;;  %v887_v3 = vld [vmem:[%s1241_s3 + $0x30] sm:$0xff]  ;;  %s297_s13 = scalar_lea.vmem %s1240_s2, %s1134_s14  ;;  %s675_s9 = sshll.u32 %s672_s28, 4  ;;  %s676_s9 = int_to_ptr.hbm [resolvable:$true] %s675_s9 }
  0x1b   : > { %458 = vmatpush.bf16.msra.mxu3 %v879_v41  ;;  %581 = vmatpush.bf16.msra.mxu2 %v888_v1  ;;  %s983_s12 = sshra.s32 %s676_s9, 4  ;;  %s984_s12 = int_to_ptr.hbm [resolvable:$true] %s983_s12 }
  0x1c   : > { %p990_p0 = scmp.lt.s32.totalorder %s984_s12, %s1244_s6 }
  0x1f   : > { %486 = vmatpush.bf16.msrb.mxu3 %v880_v42  ;;  %582 = vmatpush.bf16.msra.mxu2 %v887_v3 }
  0x21   : > { %815 = vmatmul.msk.bf16.vlgmr.msra.gmra.mxu0 %vm332_vm0, %v875_v4  ;;  %824 = vmatmul.msk.bf16.vlgmr.msra.gmra.mxu1 %vm332_vm0, %v876_v5  ;;  %v886_v4 = vld [vmem:[%s1241_s3 + $0x28] sm:$0xff] }
  0x23   : > { %583 = vmatpush.bf16.msra.mxu2 %v886_v4 }
  0x9e   : > { %v348_v8 = vpop.f32.mrf.mxu0  ;;  %v378_v9 = vpop.f32.mrf.mxu1 }
  0x9f   : > { %v349_v10 = vadd.f32 %v892_v7, %v348_v8  ;;  %v379_v11 = vadd.f32 %v892_v7, %v378_v9  ;;  %v885_v8 = vld [vmem:[%s1241_s3 + $0x20] sm:$0xff] }
  0xa0   : > { %584 = vmatpush.bf16.msra.mxu2 %v885_v8 }
  0xa1   : > { %v390_v12 = vsel %vm383_vm1, %v379_v11, -inf  ;;  %v384_v13 = vsel %vm383_vm1, %v349_v10, -inf }
  0xa2   : > { %391 = vmax.xlane.f32.xlu1 %v390_v12  ;;  %385 = vmax.xlane.f32.xlu0 %v384_v13  ;;  %v884_v12 = vld [vmem:[%s1241_s3 + $0x18] sm:$0xff] }
  0xa4   : > { %585 = vmatpush.bf16.msra.mxu2 %v884_v12 }
  0xa6   : > { %v350_v15 = vpop.f32.mrf.mxu0  ;;  %v380_v16 = vpop.f32.mrf.mxu1 }
  0xa7   : > { %v351_v17 = vadd.f32 %v893_v14, %v350_v15  ;;  %v381_v18 = vadd.f32 %v893_v14, %v380_v16  ;;  %v883_v14 = vld [vmem:[%s1241_s3 + $0x10] sm:$0xff]  ;;  %v882_v15 = vld [vmem:[%s1241_s3 + $0x8] sm:$0xff] }
  0xa8   : > { %586 = vmatpush.bf16.msra.mxu2 %v883_v14 }
  0xa9   : > { %v393_v19 = vsel %vm383_vm1, %v381_v18, -inf  ;;  %v387_v20 = vsel %vm383_vm1, %v351_v17, -inf }
  0xaa   : > { %394 = vmax.xlane.f32.xlu1 %v393_v19  ;;  %388 = vmax.xlane.f32.xlu0 %v387_v20  ;;  %v881_v19 = vld [vmem:[%s1241_s3] sm:$0xff] }
  0xac   : > { %587 = vmatpush.bf16.msra.mxu2 %v882_v15 }
  0xb0   : > { %588 = vmatpush.bf16.msra.mxu2 %v881_v19 }
 0x115   : > { %v392_v21 = vpop.xlane.xlu1 %391  ;;  %v386_v22 = vpop.xlane.xlu0 %385 }
 0x116   : > { %v398_v23 = vsub.f32 %v379_v11, %v392_v21  ;;  %v396_v24 = vsub.f32 %v349_v10, %v386_v22 }
 0x118   : > { %v404_v25 = vmul.f32 1.442695, %v398_v23  ;;  %v400_v26 = vmul.f32 1.442695, %v396_v24 }
 0x11a   : > { %947 = vpow2.f32 %v404_v25  ;;  %v895_v25 = vld [vmem:[%s297_s13] sm:$0xff]   ;;  %s985_s13 = scalar_lea.hbm %s984_s12, 16 }
 0x11b   : > { %949 = vpow2.f32 %v400_v26  ;;  %v896_v26 = vunpack.c.l.bf16 %v895_v25  ;;  %p986_p11 = scmp.ne.s32.totalorder %s984_s12, %s985_s13  ;;  %p991_p1 = scmp.lt.s32.totalorder %s989_s25, %s985_s13 }
 0x11d   : > { %v395_v27 = vpop.xlane.xlu1 %394  ;;  %v389_v28 = vpop.xlane.xlu0 %388  ;;  %p987_p12 = pnand %p986_p11, %p1109_p5  ;;  %p992_p2 = por %p991_p1, %p990_p0 }
 0x11e   : > { %v399_v29 = vsub.f32 %v381_v18, %v395_v27  ;;  %v397_v30 = vsub.f32 %v351_v17, %v389_v28  ;;  %v946_v27 = vld [vmem:[%s1242_s4] ss:$0 sm:$0xff] }
 0x11f   : > { %p988_p13 = pneg %p987_p12 }
 0x120   : > { %v948_v31 = vpop.eup %947  ;;  %v406_v32 = vmul.f32 1.442695, %v399_v29  ;;  %v402_v33 = vmul.f32 1.442695, %v397_v30 }
 0x121   : > { %v950_v34 = vpop.eup %949  ;;  %v414_v35 = vsel %vm383_vm1, %v948_v31, 0.0  ;;  %p993_p3 = pnand %p992_p2, %p988_p13 }
 0x122   : > { %951 = vpow2.f32 %v406_v32  ;;  %415 = vadd.xlane.f32.xlu0 %v414_v35  ;;  %v408_v36 = vsel %vm383_vm1, %v950_v34, 0.0  ;;  %v1034_v35 = vmov 128.0  }
 0x123   : > { %953 = vpow2.f32 %v402_v33  ;;  %409 = vadd.xlane.f32.xlu2 %v408_v36 }
 0x128   : > { %v952_v37 = vpop.eup %951 }
 0x129   : > { %v954_v38 = vpop.eup %953  ;;  %v417_v39 = vsel %vm383_vm1, %v952_v37, 0.0 }
 0x12a   : > { %418 = vadd.xlane.f32.xlu1 %v417_v39  ;;  %v411_v40 = vsel %vm383_vm1, %v954_v38, 0.0 }
 0x12b   : > { %412 = vadd.xlane.f32.xlu2 %v411_v40 }
 0x195   : > { %v416_v43 = vpop.xlane.xlu0 %415 }
 0x196   : > { %v410_v44 = vpop.xlane.xlu2 %409  ;;  %955 = vrcp.f32 %v416_v43 }
 0x197   : > { %957 = vrcp.f32 %v410_v44 }
 0x19c   : > { %v956_v45 = vpop.eup %955 }
 0x19d   : > { %v958_v46 = vpop.eup %957  ;;  %v426_v47 = vmul.f32 %v956_v45, %v948_v31  ;;  %v419_v48 = vpop.xlane.xlu1 %418  ;;  %v897_v31 = vunpack.c.h.bf16 %v895_v25 }
 0x19e   : > { %v424_v49 = vmul.f32 %v958_v46, %v950_v34  ;;  %959 = vrcp.f32 %v419_v48  ;;  %v413_v50 = vpop.xlane.xlu2 %412 }
 0x19f   : > { %v430_v51 = vpack.c.bf16 %v426_v47, %v426_v47  ;;  %961 = vrcp.f32 %v413_v50 }
 0x1a0   : > { %v428_v52 = vpack.c.bf16 %v424_v49, %v424_v49  ;;  %963 = vrcp.f32 %v1034_v35 }
 0x1a1   : > { %435 = vst.msk [vmem:[%s1153_s20 + $0x8] sm:$0xf] %vm432_vm2, %v430_v51  ;;  %v467_v63 = vunpack.c.l.b16 %v430_v51 }
 0x1a2   : > { %433 = vst.msk [vmem:[%s1153_s20] sm:$0xf] %vm432_vm2, %v428_v52  ;;  %v439_v59 = vunpack.c.l.b16 %v428_v52 }
 0x1a4   : > { %v960_v53 = vpop.eup %959 }
 0x1a5   : > { %v962_v54 = vpop.eup %961  ;;  %v427_v55 = vmul.f32 %v960_v53, %v952_v37 }
 0x1a6   : > { %v425_v56 = vmul.f32 %v962_v54, %v954_v38  ;;  %v964_v36 = vpop.eup %963 }
 0x1a7   : > { %v431_v57 = vpack.c.bf16 %v427_v55, %v427_v55  ;;  %v606_v37 = vmul.f32 128.0, %v964_v36  ;;  %vm610_vm3 = vweird.f32 %v964_v36 }
 0x1a8   : > { %v429_v58 = vpack.c.bf16 %v425_v56, %v425_v56 }
 0x1a9   : > { %436 = vst.msk [vmem:[%s1153_s20 + $0xc] sm:$0xf] %vm432_vm2, %v431_v57  ;;  %v468_v62 = vunpack.c.l.b16 %v431_v57  ;;  %v607_v38 = vsub.f32 1.0, %v606_v37 }
 0x1aa   : > { %434 = vst.msk [vmem:[%s1153_s20 + $0x4] sm:$0xf] %vm432_vm2, %v429_v58  ;;  %v440_v60 = vunpack.c.l.b16 %v429_v58 }
 0x1ab   : > { %v469_v0 = vpack.c.b16 %v468_v62, %v467_v63  ;;  %v608_v39 = vmul.f32 %v964_v36, %v607_v38 }
 0x1ac   : > { %v441_v61 = vpack.c.b16 %v440_v60, %v439_v59 }
 0x1ad   : > { %v609_v40 = vadd.f32 %v964_v36, %v608_v39 }
 0x1ae   : > { %829 = vmatmul.msk.bf16.vlgmr.msra.gmra.mxu3 %vm383_vm1, %v441_v61 }
 0x1af   : > { %v611_v41 = vsel %vm610_vm3, %v964_v36, %v609_v40 }
 0x1be   : > { %834 = vmatmul.msk.bf16.vlgmr.msrb.gmra.mxu3 %vm383_vm1, %v469_v0 }
 0x231   : > { %v460_v2 = vpop.f32.mrf.mxu3 }
 0x232   : > { %v493_v5 = vpack.c.bf16 %v460_v2, %v460_v2 }
 0x234   : > { %v499_v9 = vunpack.c.l.b16 %v493_v5 }
 0x239   : > { %v462_v6 = vpop.f32.mrf.mxu3 }
 0x23a   : > { %v494_v7 = vpack.c.bf16 %v462_v6, %v462_v6 }
 0x23c   : > { %v500_v10 = vunpack.c.l.b16 %v494_v7 }
 0x23e   : > { %v501_v11 = vpack.c.b16 %v500_v10, %v499_v9 }
 0x241   : > { %v488_v13 = vpop.f32.mrf.mxu3 }
 0x242   : > { %v495_v16 = vpack.c.bf16 %v488_v13, %v488_v13 }
 0x244   : > { %v504_v20 = vunpack.c.l.b16 %v495_v16 }
 0x249   : > { %v490_v17 = vpop.f32.mrf.mxu3 }
 0x24a   : > { %v496_v18 = vpack.c.bf16 %v490_v17, %v490_v17 }
 0x24c   : > { %v505_v21 = vunpack.c.l.b16 %v496_v18 }
 0x24e   : > { %v506_v22 = vpack.c.b16 %v505_v21, %v504_v20 }
 0x250   : > { %507 = vrot.lane.b32.xlu2 %v506_v22, %s1245_s10 }
 0x2aa   : > { %v508_v23 = vpop.permute.xlu2 %507 }
 0x2ab   : > { %v511_v24 = vsel %vm332_vm0, %v501_v11, %v508_v23 }
 0x2ac   : > { %589 = vmatmul.bf16.vlgmr.msra.gmra.mxu2 %v511_v24 }
 0x32f   : > { %v590_v28 = vpop.f32.mrf.mxu2 }
 0x330   : > { %v591_v29 = vadd.f32 %v896_v26, %v590_v28 }
 0x332   : > { %v599_v30 = vadd.f32 %v946_v27, %v591_v29 }
 0x334   : > { %601 = vadd.xlane.f32.xlu0 %v599_v30 }
 0x337   : > { %v592_v32 = vpop.f32.mrf.mxu2 }
 0x338   : > { %v593_v33 = vadd.f32 %v897_v31, %v592_v32 }
 0x33a   : > { %v600_v34 = vadd.f32 %v946_v27, %v593_v33 }
 0x33c   : > { %603 = vadd.xlane.f32.xlu1 %v600_v34 }
 0x3a7   : > { %v602_v42 = vpop.xlane.xlu0 %601 }
 0x3a8   : > { %v612_v43 = vmul.f32 %v611_v41, %v602_v42 }
 0x3aa   : > { %v614_v44 = vsub.f32 %v599_v30, %v612_v43 }
 0x3ac   : > { %v616_v45 = vmul.f32 %v614_v44, %v614_v44 }
 0x3ae   : > { %618 = vadd.xlane.f32.xlu0 %v616_v45 }
 0x3af   : > { %v604_v46 = vpop.xlane.xlu1 %603 }
 0x3b0   : > { %v613_v47 = vmul.f32 %v611_v41, %v604_v46 }
 0x3b2   : > { %v615_v48 = vsub.f32 %v600_v34, %v613_v47 }
 0x3b4   : > { %v617_v49 = vmul.f32 %v615_v48, %v615_v48 }
 0x3b6   : > { %620 = vadd.xlane.f32.xlu1 %v617_v49 }
 0x3b7   : > { %996 = shalt.err (!%p993_p3)
}
 0x3b8   : > { %s1035_s18 = smov 4   ;;  %s1248_s20 = smov 64  }
 0x3b9   : > { %904 = dma.vmem_to_hbm [thread:$0]  (%p1109_p5), %s674_s29, 256, %s676_s9, %s658_s11, %s1248_s20, %s1248_s20, %s1035_s18  }
 0x3ba   : > { %s302_s17 = scalar_lea.vmem %s1243_s5, %s1134_s14 }
 0x421   : > { %v619_v50 = vpop.xlane.xlu0 %618 }
 0x422   : > { %v622_v51 = vmul.f32 %v619_v50, %v611_v41 }
 0x424   : > { %v624_v52 = vadd.f32 1e-05, %v622_v51 }
 0x426   : > { %965 = vrsqrt.f32 %v624_v52  ;;  %vm632_vm5 = vweird.f32 %v624_v52 }
 0x429   : > { %v621_v53 = vpop.xlane.xlu1 %620 }
 0x42a   : > { %v623_v54 = vmul.f32 %v621_v53, %v611_v41 }
 0x42c   : > { %v966_v55 = vpop.eup %965  ;;  %v625_v56 = vadd.f32 1e-05, %v623_v54 }
 0x42d   : > { %v627_v57 = vmul.f32 %v966_v55, %v624_v52  ;;  %vm633_vm4 = vweird.f32 %v966_v55 }
 0x42e   : > { %967 = vrsqrt.f32 %v625_v56  ;;  %vm634_vm7 = vmor %vm632_vm5, %vm633_vm4  ;;  %vm642_vm8 = vweird.f32 %v625_v56 }
 0x42f   : > { %v628_v58 = vmul.f32 %v966_v55, %v627_v57 }
 0x431   : > { %v629_v59 = vmul.f32 0.5, %v628_v58 }
 0x433   : > { %v630_v61 = vsub.f32 1.5, %v629_v59 }
 0x434   : > { %v968_v60 = vpop.eup %967 }
 0x435   : > { %v637_v62 = vmul.f32 %v968_v60, %v625_v56  ;;  %v631_v0 = vmul.f32 %v966_v55, %v630_v61  ;;  %vm643_vm6 = vweird.f32 %v968_v60 }
 0x436   : > { %vm644_vm9 = vmor %vm642_vm8, %vm643_vm6 }
 0x437   : > { %v638_v63 = vmul.f32 %v968_v60, %v637_v62  ;;  %v635_v3 = vsel %vm634_vm7, %v966_v55, %v631_v0 }
 0x438   : > { %v646_v6 = vmul.f32 %v635_v3, %v614_v44 }
 0x439   : > { %v639_v1 = vmul.f32 0.5, %v638_v63 }
 0x43b   : > { %v640_v2 = vsub.f32 1.5, %v639_v1 }
 0x43d   : > { %v641_v4 = vmul.f32 %v968_v60, %v640_v2 }
 0x43f   : > { %v645_v5 = vsel %vm644_vm9, %v968_v60, %v641_v4 }
 0x440   : > { %v647_v7 = vmul.f32 %v645_v5, %v615_v48 }
 0x442   : > { %v901_v8 = vpack.c.bf16 %v647_v7, %v646_v6 }
 0x444   : > { %902 = vst [vmem:[%s302_s17] sm:$0xff] %v901_v8  }
 0x445 PF: > { %p910_p4 = scmp.ge.s32.totalorder %s1031_s24, 2  ;;  %s698_s26 = sand.u32 1, %s1019_s21  }
 0x446   : > { %s699_s28 = scalar_lea.sflag [#allocation3], %s698_s26 }
 0x447   : > { %p907_p5 = pnand %p910_p4, %p1113_p6 }
 0x449   : > { %p908_p7 = pneg %p907_p5 }
 0x44b   : > { %1014 = dma.done.wait (%p908_p7), %s699_s28, 256  }
 0x44c   : > { %1016 = vsyncadd (%p908_p7), %s699_s28, 4294967040  ;;  %p17_p8 = scmp.ge.s32.totalorder %s1096_s27, 4   ;;  %s1249_s21 = smov %s1023_s22 }
 0x44d   : > { %s1250_s22 = smov %s1027_s23  ;;  %s1251_s23 = smov %s1107_s30 }
 0x44e   : > { %s1252_s24 = smov %s1096_s27  ;;  %19 = sbr.rel (!%p17_p8) target bundleno = 3 (0x3), region = 95 }
 0x453   :  { %705 = vsyncpa [#allocation3], 1 }
 0x454   :  { %707 = vsyncpa [#allocation3 + $0x1], 1 }

</bundles_post_ra>
